<compile_context>
chip_gen: v7x
topology: tpu7x:2x2x1
jax: 0.10.0
libtpu: 0.0.40
codegen_flags: <defaults>
</compile_context>

<pallas_src>
import jax
import jax.numpy as jnp
from jax import lax
from jax.experimental import pallas as pl
from jax.experimental.pallas import tpu as pltpu


def _client_model_kernel(x_ref, w1_ref, b1_ref, w2_ref, b2_ref, o_ref,
                         xpad_ref, h1pad_ref, t2_ref):
    """Fused conv1+relu+pool -> conv2+relu+pool for one batch block.

    x_ref:     (Bb, H, W, 1)           input (NHWC, Cin=1)
    w1_ref:    (9, C1)                 conv1 3x3 taps, row = 3*dy + dx
    b1_ref:    (1, C1)
    w2_ref:    (9, C1, C2)             conv2 taps, [3*dy+dx, cin, cout]
    b2_ref:    (1, C2)
    o_ref:     (Bb, H//4, W//4, C2)    pooled conv2 output (NHWC)
    scratch:
      xpad_ref  (Bb, H+2, W+2, C1)     zero-padded input, broadcast over C1
      h1pad_ref (Bb, H//2+2, W+4, C1)  H-pooled conv1, zero-padded, W unpooled
      t2_ref    (Bb, H//4, W//2, C2)   conv2 output after H-pooling
    """
    Bb, H, W, _ = x_ref.shape
    C1 = w1_ref.shape[1]
    C2 = w2_ref.shape[2]
    H1, W1 = H // 2, W // 2
    H2, W2 = H1 // 2, W1 // 2
    f32 = jnp.float32

    # ---- stage 0: zero-pad input into VMEM (border strips only) -------------
    xpad_ref[:, 0:1, :, :] = jnp.zeros((Bb, 1, W + 2, C1), f32)
    xpad_ref[:, H + 1:H + 2, :, :] = jnp.zeros((Bb, 1, W + 2, C1), f32)
    xpad_ref[:, 1:H + 1, 0:1, :] = jnp.zeros((Bb, H, 1, C1), f32)
    xpad_ref[:, 1:H + 1, W + 1:W + 2, :] = jnp.zeros((Bb, H, 1, C1), f32)
    xpad_ref[:, 1:H + 1, 1:W + 1, :] = jnp.broadcast_to(
        x_ref[...], (Bb, H, W, C1))

    # ---- stage 1: conv1 = 9 whole-tensor FMAs, bias + relu, H-pool ----------
    w1 = w1_ref[...]                                   # (9, C1), read once
    b1 = b1_ref[...]                                   # (1, C1)
    acc = xpad_ref[:, 0:H, 0:W, :] * w1[0]
    for tap in range(1, 9):
        dy, dx = tap // 3, tap % 3
        acc = acc + xpad_ref[:, dy:dy + H, dx:dx + W, :] * w1[tap]
    y1 = jnp.maximum(acc + b1, 0.0)                    # (Bb, H, W, C1)
    y1h = y1.reshape(Bb, H1, 2, W, C1).max(axis=2)     # H-pool (major-dim split)

    # ---- stage 1b: store H-pooled conv1, padded; W-pool is deferred ---------
    # Pooled column wp lives at h1pad columns {2+2wp, 3+2wp}; borders are zero.
    h1pad_ref[:, 0:1, :, :] = jnp.zeros((Bb, 1, W + 4, C1), f32)
    h1pad_ref[:, H1 + 1:H1 + 2, :, :] = jnp.zeros((Bb, 1, W + 4, C1), f32)
    h1pad_ref[:, 1:H1 + 1, 0:2, :] = jnp.zeros((Bb, H1, 2, C1), f32)
    h1pad_ref[:, 1:H1 + 1, W + 2:W + 4, :] = jnp.zeros((Bb, H1, 2, C1), f32)
    h1pad_ref[:, 1:H1 + 1, 2:W + 2, :] = y1h

    # ---- stage 2: conv2 as 9 accumulating (M,C1)x(C1,C2) MXU matmuls --------
    # The conv1 W-pool is fused here: each dx shift reads an even/odd stride-2
    # column pair of h1pad and maxes them (shared across the 3 dy taps).
    w2 = w2_ref[...]                                   # (9, C1, C2), read once
    b2 = b2_ref[...]                                   # (1, C2)
    M = Bb * H1 * W1
    acc2 = jnp.zeros((M, C2), f32)
    for dx in range(3):
        pooled = jnp.maximum(                          # (Bb, H1+2, W1, C1)
            h1pad_ref[:, :, pl.ds(2 * dx, W1, 2), :],
            h1pad_ref[:, :, pl.ds(2 * dx + 1, W1, 2), :])
        for dy in range(3):
            patch = pooled[:, dy:dy + H1, :, :]        # (Bb, H1, W1, C1)
            acc2 = acc2 + jnp.dot(patch.reshape(M, C1), w2[3 * dy + dx],
                                  preferred_element_type=f32)
    y2 = jnp.maximum(acc2 + b2, 0.0).reshape(Bb, H1, W1, C2)

    # ---- stage 3: 2x2 maxpool of conv2, NHWC output --------------------------
    t2_ref[...] = y2.reshape(Bb, H2, 2, W1, C2).max(axis=2)   # H-pool on value
    o_ref[...] = jnp.maximum(t2_ref[:, :, pl.ds(0, W2, 2), :],
                             t2_ref[:, :, pl.ds(1, W2, 2), :])


def client_model_fused(x_nhwc1, w1, b1, w2, b2, *, block_b=1):
    """x_nhwc1: (B, H, W, 1) f32 -> pooled conv2 activations (B, H//4, W//4, C2)."""
    B, H, W, _ = x_nhwc1.shape
    assert H % 4 == 0 and W % 4 == 0, "spatial dims must be divisible by 4"
    assert B % block_b == 0, "batch must be divisible by the batch block"
    C1 = w1.shape[1]
    C2 = w2.shape[2]
    H1, W1 = H // 2, W // 2
    H2, W2 = H1 // 2, W1 // 2

    grid_spec = pltpu.PrefetchScalarGridSpec(
        num_scalar_prefetch=0,
        grid=(B // block_b,),
        in_specs=[
            pl.BlockSpec((block_b, H, W, 1), lambda i: (i, 0, 0, 0)),
            pl.BlockSpec((9, C1), lambda i: (0, 0)),
            pl.BlockSpec((1, C1), lambda i: (0, 0)),
            pl.BlockSpec((9, C1, C2), lambda i: (0, 0, 0)),
            pl.BlockSpec((1, C2), lambda i: (0, 0)),
        ],
        out_specs=pl.BlockSpec((block_b, H2, W2, C2), lambda i: (i, 0, 0, 0)),
        scratch_shapes=[
            pltpu.VMEM((block_b, H + 2, W + 2, C1), jnp.float32),    # padded x
            pltpu.VMEM((block_b, H1 + 2, W + 4, C1), jnp.float32),   # padded h1
            pltpu.VMEM((block_b, H2, W1, C2), jnp.float32),          # conv2 H-pooled
        ],
    )
    return pl.pallas_call(
        _client_model_kernel,
        out_shape=jax.ShapeDtypeStruct((B, H2, W2, C2), jnp.float32),
        grid_spec=grid_spec,
        compiler_params=pltpu.CompilerParams(
            dimension_semantics=("parallel",)),   # batch-parallel: both TCs on v7x
    )(x_nhwc1, w1, b1, w2, b2)


def init_params(key):
    """Deterministic synthetic parameters in kernel-ready layout.

    w1[3*dy+dx, cout]        == torch conv1.weight[cout, 0, dy, dx]
    w2[3*dy+dx, cin, cout]   == torch conv2.weight[cout, cin, dy, dx]
    """
    k1, k2, k3, k4 = jax.random.split(key, 4)
    w1 = jax.random.normal(k1, (9, 16), jnp.float32) * 0.1
    b1 = jax.random.normal(k2, (1, 16), jnp.float32) * 0.1
    w2 = jax.random.normal(k3, (9, 16, 32), jnp.float32) * 0.05
    b2 = jax.random.normal(k4, (1, 32), jnp.float32) * 0.05
    return dict(w1=w1, b1=b1, w2=w2, b2=b2)


@jax.jit
def client_model_forward(x_nchw, params):
    B, _, H, W = x_nchw.shape
    # Cin == 1, so NCHW -> NHWC is a free bitcast reshape (same linear layout).
    x4 = x_nchw.reshape(B, H, W, 1).astype(jnp.float32)
    h = client_model_fused(x4, params["w1"], params["b1"],
                           params["w2"], params["b2"])        # (B, 4, 4, 32)
    # PyTorch flattens NCHW: x.view(B, -1)  ->  channel-major ordering.
    return jnp.transpose(h, (0, 3, 1, 2)).reshape(B, -1)


def _reference_forward(x_nchw, params):
    """Pure-JAX reference (XLA conv / reduce_window) for correctness check."""
    x = jnp.transpose(x_nchw, (0, 2, 3, 1)).astype(jnp.float32)

    def block(x, w_hwio, b):
        y = lax.conv_general_dilated(
            x, w_hwio, window_strides=(1, 1), padding="SAME",
            dimension_numbers=("NHWC", "HWIO", "NHWC"))
        y = jnp.maximum(y + b.reshape(1, 1, 1, -1), 0.0)
        return lax.reduce_window(y, -jnp.inf, lax.max,
                                 (1, 2, 2, 1), (1, 2, 2, 1), "VALID")

    h1 = block(x, params["w1"].reshape(3, 3, 1, 16), params["b1"])
    h2 = block(h1, params["w2"].reshape(3, 3, 16, 32), params["b2"])
    return jnp.transpose(h2, (0, 3, 1, 2)).reshape(h2.shape[0], -1)


if __name__ == "__main__":
    key = jax.random.PRNGKey(0)
    pkey, xkey = jax.random.split(key)
    params = init_params(pkey)
    # PyTorch-style NCHW input: batch=2, channels=1, spatial=16x16.
    x = jax.random.normal(xkey, (2, 1, 16, 16), jnp.float32)

    out = jax.block_until_ready(client_model_forward(x, params))
    assert out.shape == (2, 32 * 4 * 4), out.shape

    ref = _reference_forward(x, params)
    max_err = float(jnp.max(jnp.abs(out - ref)))
    assert jnp.allclose(out, ref, atol=2e-3, rtol=2e-3), max_err

    print("KERNEL_OK")
</pallas_src>

<mosaic_0001>
module attributes {stable_mosaic.version = 11 : i64} {
  func.func @_client_model_kernel(%arg0: i32, %arg1: memref<1x16x16x1xf32, #tpu.memory_space<vmem>>, %arg2: memref<9x16xf32, #tpu.memory_space<vmem>>, %arg3: memref<1x16xf32, #tpu.memory_space<vmem>>, %arg4: memref<9x16x32xf32, #tpu.memory_space<vmem>>, %arg5: memref<1x32xf32, #tpu.memory_space<vmem>>, %arg6: memref<1x4x4x32xf32, #tpu.memory_space<vmem>>, %arg7: memref<1x18x18x16xf32, #tpu.memory_space<vmem>>, %arg8: memref<1x10x20x16xf32, #tpu.memory_space<vmem>>, %arg9: memref<1x4x8x32xf32, #tpu.memory_space<vmem>>) attributes {dimension_semantics = [#tpu.dimension_semantics<parallel>], iteration_bounds = array<i64: 2>, scalar_prefetch = 0 : i64, scratch_operands = 3 : i64, tpu.core_type = #tpu.core_type<tc>, window_params = [{transform_indices = @transform_0, window_bounds = array<i64: 1, 16, 16, 1>}, {pipeline_mode = #tpu.pipeline_mode<synchronous>, transform_indices = @transform_1, window_bounds = array<i64: 9, 16>}, {pipeline_mode = #tpu.pipeline_mode<synchronous>, transform_indices = @transform_2, window_bounds = array<i64: 1, 16>}, {pipeline_mode = #tpu.pipeline_mode<synchronous>, transform_indices = @transform_3, window_bounds = array<i64: 9, 16, 32>}, {pipeline_mode = #tpu.pipeline_mode<synchronous>, transform_indices = @transform_4, window_bounds = array<i64: 1, 32>}, {transform_indices = @transform_5, window_bounds = array<i64: 1, 4, 4, 32>}]} {
    %cst = arith.constant 0.000000e+00 : f32
    %0 = vector.broadcast %cst : f32 to vector<1x1x18x16xf32>
    %c0 = arith.constant 0 : index
    %c0_0 = arith.constant 0 : index
    %c0_1 = arith.constant 0 : index
    %c0_2 = arith.constant 0 : index
    %1 = vector.load %arg7[%c0, %c0_0, %c0_1, %c0_2] : memref<1x18x18x16xf32, #tpu.memory_space<vmem>>, vector<1x1x18x16xf32>
    tpu.vector_store %arg7[%c0, %c0_0, %c0_1, %c0_2], %0 {strides = array<i32>} : memref<1x18x18x16xf32, #tpu.memory_space<vmem>>, vector<1x1x18x16xf32>,
    %cst_3 = arith.constant 0.000000e+00 : f32
    %2 = vector.broadcast %cst_3 : f32 to vector<1x1x18x16xf32>
    %c0_4 = arith.constant 0 : index
    %c17 = arith.constant 17 : index
    %c0_5 = arith.constant 0 : index
    %c0_6 = arith.constant 0 : index
    %3 = vector.load %arg7[%c0_4, %c17, %c0_5, %c0_6] : memref<1x18x18x16xf32, #tpu.memory_space<vmem>>, vector<1x1x18x16xf32>
    tpu.vector_store %arg7[%c0_4, %c17, %c0_5, %c0_6], %2 {strides = array<i32>} : memref<1x18x18x16xf32, #tpu.memory_space<vmem>>, vector<1x1x18x16xf32>,
    %cst_7 = arith.constant 0.000000e+00 : f32
    %4 = vector.broadcast %cst_7 : f32 to vector<1x16x1x16xf32>
    %c0_8 = arith.constant 0 : index
    %c1 = arith.constant 1 : index
    %c0_9 = arith.constant 0 : index
    %c0_10 = arith.constant 0 : index
    %5 = vector.load %arg7[%c0_8, %c1, %c0_9, %c0_10] : memref<1x18x18x16xf32, #tpu.memory_space<vmem>>, vector<1x16x1x16xf32>
    tpu.vector_store %arg7[%c0_8, %c1, %c0_9, %c0_10], %4 {strides = array<i32>} : memref<1x18x18x16xf32, #tpu.memory_space<vmem>>, vector<1x16x1x16xf32>,
    %cst_11 = arith.constant 0.000000e+00 : f32
    %6 = vector.broadcast %cst_11 : f32 to vector<1x16x1x16xf32>
    %c0_12 = arith.constant 0 : index
    %c1_13 = arith.constant 1 : index
    %c17_14 = arith.constant 17 : index
    %c0_15 = arith.constant 0 : index
    %7 = vector.load %arg7[%c0_12, %c1_13, %c17_14, %c0_15] : memref<1x18x18x16xf32, #tpu.memory_space<vmem>>, vector<1x16x1x16xf32>
    tpu.vector_store %arg7[%c0_12, %c1_13, %c17_14, %c0_15], %6 {strides = array<i32>} : memref<1x18x18x16xf32, #tpu.memory_space<vmem>>, vector<1x16x1x16xf32>,
    %c0_16 = arith.constant 0 : index
    %c0_17 = arith.constant 0 : index
    %c0_18 = arith.constant 0 : index
    %c0_19 = arith.constant 0 : index
    %8 = vector.load %arg1[%c0_16, %c0_17, %c0_18, %c0_19] : memref<1x16x16x1xf32, #tpu.memory_space<vmem>>, vector<1x16x16x1xf32>
    %9 = vector.shape_cast %8 : vector<1x16x16x1xf32> to vector<1x16x16x1xf32>
    %10 = vector.broadcast %9 : vector<1x16x16x1xf32> to vector<1x16x16x16xf32>
    %c0_20 = arith.constant 0 : index
    %c1_21 = arith.constant 1 : index
    %c1_22 = arith.constant 1 : index
    %c0_23 = arith.constant 0 : index
    %11 = vector.load %arg7[%c0_20, %c1_21, %c1_22, %c0_23] : memref<1x18x18x16xf32, #tpu.memory_space<vmem>>, vector<1x16x16x16xf32>
    tpu.vector_store %arg7[%c0_20, %c1_21, %c1_22, %c0_23], %10 {strides = array<i32>} : memref<1x18x18x16xf32, #tpu.memory_space<vmem>>, vector<1x16x16x16xf32>,
    %c0_24 = arith.constant 0 : index
    %c0_25 = arith.constant 0 : index
    %12 = vector.load %arg2[%c0_24, %c0_25] : memref<9x16xf32, #tpu.memory_space<vmem>>, vector<9x16xf32>
    %c0_26 = arith.constant 0 : index
    %c0_27 = arith.constant 0 : index
    %13 = vector.load %arg3[%c0_26, %c0_27] : memref<1x16xf32, #tpu.memory_space<vmem>>, vector<1x16xf32>
    %c0_28 = arith.constant 0 : index
    %c0_29 = arith.constant 0 : index
    %c0_30 = arith.constant 0 : index
    %c0_31 = arith.constant 0 : index
    %14 = vector.load %arg7[%c0_28, %c0_29, %c0_30, %c0_31] : memref<1x18x18x16xf32, #tpu.memory_space<vmem>>, vector<1x16x16x16xf32>
    %15 = vector.extract_strided_slice %12 {offsets = [0, 0], sizes = [1, 16], strides = [1, 1]} : vector<9x16xf32> to vector<1x16xf32>
    %16 = vector.shape_cast %15 : vector<1x16xf32> to vector<16xf32>
    %17 = vector.shape_cast %16 : vector<16xf32> to vector<1x1x1x16xf32>
    %18 = vector.broadcast %17 : vector<1x1x1x16xf32> to vector<1x16x16x16xf32>
    %19 = arith.mulf %14, %18 : vector<1x16x16x16xf32>
    %c0_32 = arith.constant 0 : index
    %c0_33 = arith.constant 0 : index
    %c1_34 = arith.constant 1 : index
    %c0_35 = arith.constant 0 : index
    %20 = vector.load %arg7[%c0_32, %c0_33, %c1_34, %c0_35] : memref<1x18x18x16xf32, #tpu.memory_space<vmem>>, vector<1x16x16x16xf32>
    %21 = vector.extract_strided_slice %12 {offsets = [1, 0], sizes = [1, 16], strides = [1, 1]} : vector<9x16xf32> to vector<1x16xf32>
    %22 = vector.shape_cast %21 : vector<1x16xf32> to vector<16xf32>
    %23 = vector.shape_cast %22 : vector<16xf32> to vector<1x1x1x16xf32>
    %24 = vector.broadcast %23 : vector<1x1x1x16xf32> to vector<1x16x16x16xf32>
    %25 = arith.mulf %20, %24 : vector<1x16x16x16xf32>
    %26 = arith.addf %19, %25 : vector<1x16x16x16xf32>
    %c0_36 = arith.constant 0 : index
    %c0_37 = arith.constant 0 : index
    %c2 = arith.constant 2 : index
    %c0_38 = arith.constant 0 : index
    %27 = vector.load %arg7[%c0_36, %c0_37, %c2, %c0_38] : memref<1x18x18x16xf32, #tpu.memory_space<vmem>>, vector<1x16x16x16xf32>
    %28 = vector.extract_strided_slice %12 {offsets = [2, 0], sizes = [1, 16], strides = [1, 1]} : vector<9x16xf32> to vector<1x16xf32>
    %29 = vector.shape_cast %28 : vector<1x16xf32> to vector<16xf32>
    %30 = vector.shape_cast %29 : vector<16xf32> to vector<1x1x1x16xf32>
    %31 = vector.broadcast %30 : vector<1x1x1x16xf32> to vector<1x16x16x16xf32>
    %32 = arith.mulf %27, %31 : vector<1x16x16x16xf32>
    %33 = arith.addf %26, %32 : vector<1x16x16x16xf32>
    %c0_39 = arith.constant 0 : index
    %c1_40 = arith.constant 1 : index
    %c0_41 = arith.constant 0 : index
    %c0_42 = arith.constant 0 : index
    %34 = vector.load %arg7[%c0_39, %c1_40, %c0_41, %c0_42] : memref<1x18x18x16xf32, #tpu.memory_space<vmem>>, vector<1x16x16x16xf32>
    %35 = vector.extract_strided_slice %12 {offsets = [3, 0], sizes = [1, 16], strides = [1, 1]} : vector<9x16xf32> to vector<1x16xf32>
    %36 = vector.shape_cast %35 : vector<1x16xf32> to vector<16xf32>
    %37 = vector.shape_cast %36 : vector<16xf32> to vector<1x1x1x16xf32>
    %38 = vector.broadcast %37 : vector<1x1x1x16xf32> to vector<1x16x16x16xf32>
    %39 = arith.mulf %34, %38 : vector<1x16x16x16xf32>
    %40 = arith.addf %33, %39 : vector<1x16x16x16xf32>
    %c0_43 = arith.constant 0 : index
    %c1_44 = arith.constant 1 : index
    %c1_45 = arith.constant 1 : index
    %c0_46 = arith.constant 0 : index
    %41 = vector.load %arg7[%c0_43, %c1_44, %c1_45, %c0_46] : memref<1x18x18x16xf32, #tpu.memory_space<vmem>>, vector<1x16x16x16xf32>
    %42 = vector.extract_strided_slice %12 {offsets = [4, 0], sizes = [1, 16], strides = [1, 1]} : vector<9x16xf32> to vector<1x16xf32>
    %43 = vector.shape_cast %42 : vector<1x16xf32> to vector<16xf32>
    %44 = vector.shape_cast %43 : vector<16xf32> to vector<1x1x1x16xf32>
    %45 = vector.broadcast %44 : vector<1x1x1x16xf32> to vector<1x16x16x16xf32>
    %46 = arith.mulf %41, %45 : vector<1x16x16x16xf32>
    %47 = arith.addf %40, %46 : vector<1x16x16x16xf32>
    %c0_47 = arith.constant 0 : index
    %c1_48 = arith.constant 1 : index
    %c2_49 = arith.constant 2 : index
    %c0_50 = arith.constant 0 : index
    %48 = vector.load %arg7[%c0_47, %c1_48, %c2_49, %c0_50] : memref<1x18x18x16xf32, #tpu.memory_space<vmem>>, vector<1x16x16x16xf32>
    %49 = vector.extract_strided_slice %12 {offsets = [5, 0], sizes = [1, 16], strides = [1, 1]} : vector<9x16xf32> to vector<1x16xf32>
    %50 = vector.shape_cast %49 : vector<1x16xf32> to vector<16xf32>
    %51 = vector.shape_cast %50 : vector<16xf32> to vector<1x1x1x16xf32>
    %52 = vector.broadcast %51 : vector<1x1x1x16xf32> to vector<1x16x16x16xf32>
    %53 = arith.mulf %48, %52 : vector<1x16x16x16xf32>
    %54 = arith.addf %47, %53 : vector<1x16x16x16xf32>
    %c0_51 = arith.constant 0 : index
    %c2_52 = arith.constant 2 : index
    %c0_53 = arith.constant 0 : index
    %c0_54 = arith.constant 0 : index
    %55 = vector.load %arg7[%c0_51, %c2_52, %c0_53, %c0_54] : memref<1x18x18x16xf32, #tpu.memory_space<vmem>>, vector<1x16x16x16xf32>
    %56 = vector.extract_strided_slice %12 {offsets = [6, 0], sizes = [1, 16], strides = [1, 1]} : vector<9x16xf32> to vector<1x16xf32>
    %57 = vector.shape_cast %56 : vector<1x16xf32> to vector<16xf32>
    %58 = vector.shape_cast %57 : vector<16xf32> to vector<1x1x1x16xf32>
    %59 = vector.broadcast %58 : vector<1x1x1x16xf32> to vector<1x16x16x16xf32>
    %60 = arith.mulf %55, %59 : vector<1x16x16x16xf32>
    %61 = arith.addf %54, %60 : vector<1x16x16x16xf32>
    %c0_55 = arith.constant 0 : index
    %c2_56 = arith.constant 2 : index
    %c1_57 = arith.constant 1 : index
    %c0_58 = arith.constant 0 : index
    %62 = vector.load %arg7[%c0_55, %c2_56, %c1_57, %c0_58] : memref<1x18x18x16xf32, #tpu.memory_space<vmem>>, vector<1x16x16x16xf32>
    %63 = vector.extract_strided_slice %12 {offsets = [7, 0], sizes = [1, 16], strides = [1, 1]} : vector<9x16xf32> to vector<1x16xf32>
    %64 = vector.shape_cast %63 : vector<1x16xf32> to vector<16xf32>
    %65 = vector.shape_cast %64 : vector<16xf32> to vector<1x1x1x16xf32>
    %66 = vector.broadcast %65 : vector<1x1x1x16xf32> to vector<1x16x16x16xf32>
    %67 = arith.mulf %62, %66 : vector<1x16x16x16xf32>
    %68 = arith.addf %61, %67 : vector<1x16x16x16xf32>
    %c0_59 = arith.constant 0 : index
    %c2_60 = arith.constant 2 : index
    %c2_61 = arith.constant 2 : index
    %c0_62 = arith.constant 0 : index
    %69 = vector.load %arg7[%c0_59, %c2_60, %c2_61, %c0_62] : memref<1x18x18x16xf32, #tpu.memory_space<vmem>>, vector<1x16x16x16xf32>
    %70 = vector.extract_strided_slice %12 {offsets = [8, 0], sizes = [1, 16], strides = [1, 1]} : vector<9x16xf32> to vector<1x16xf32>
    %71 = vector.shape_cast %70 : vector<1x16xf32> to vector<16xf32>
    %72 = vector.shape_cast %71 : vector<16xf32> to vector<1x1x1x16xf32>
    %73 = vector.broadcast %72 : vector<1x1x1x16xf32> to vector<1x16x16x16xf32>
    %74 = arith.mulf %69, %73 : vector<1x16x16x16xf32>
    %75 = arith.addf %68, %74 : vector<1x16x16x16xf32>
    %76 = vector.shape_cast %13 : vector<1x16xf32> to vector<1x1x1x16xf32>
    %77 = vector.broadcast %76 : vector<1x1x1x16xf32> to vector<1x16x16x16xf32>
    %78 = arith.addf %75, %77 : vector<1x16x16x16xf32>
    %cst_63 = arith.constant 0.000000e+00 : f32
    %79 = vector.broadcast %cst_63 : f32 to vector<1x16x16x16xf32>
    %80 = arith.maximumf %78, %79 : vector<1x16x16x16xf32>
    %81 = vector.shape_cast %80 : vector<1x16x16x16xf32> to vector<1x8x2x16x16xf32>
    %cst_64 = arith.constant dense<0xFF800000> : vector<1x8x16x16xf32>
    %82 = vector.multi_reduction <maximumf>, %81, %cst_64 [2] : vector<1x8x2x16x16xf32> to vector<1x8x16x16xf32>
    %cst_65 = arith.constant 0.000000e+00 : f32
    %83 = vector.broadcast %cst_65 : f32 to vector<1x1x20x16xf32>
    %c0_66 = arith.constant 0 : index
    %c0_67 = arith.constant 0 : index
    %c0_68 = arith.constant 0 : index
    %c0_69 = arith.constant 0 : index
    %84 = vector.load %arg8[%c0_66, %c0_67, %c0_68, %c0_69] : memref<1x10x20x16xf32, #tpu.memory_space<vmem>>, vector<1x1x20x16xf32>
    tpu.vector_store %arg8[%c0_66, %c0_67, %c0_68, %c0_69], %83 {strides = array<i32>} : memref<1x10x20x16xf32, #tpu.memory_space<vmem>>, vector<1x1x20x16xf32>,
    %cst_70 = arith.constant 0.000000e+00 : f32
    %85 = vector.broadcast %cst_70 : f32 to vector<1x1x20x16xf32>
    %c0_71 = arith.constant 0 : index
    %c9 = arith.constant 9 : index
    %c0_72 = arith.constant 0 : index
    %c0_73 = arith.constant 0 : index
    %86 = vector.load %arg8[%c0_71, %c9, %c0_72, %c0_73] : memref<1x10x20x16xf32, #tpu.memory_space<vmem>>, vector<1x1x20x16xf32>
    tpu.vector_store %arg8[%c0_71, %c9, %c0_72, %c0_73], %85 {strides = array<i32>} : memref<1x10x20x16xf32, #tpu.memory_space<vmem>>, vector<1x1x20x16xf32>,
    %cst_74 = arith.constant 0.000000e+00 : f32
    %87 = vector.broadcast %cst_74 : f32 to vector<1x8x2x16xf32>
    %c0_75 = arith.constant 0 : index
    %c1_76 = arith.constant 1 : index
    %c0_77 = arith.constant 0 : index
    %c0_78 = arith.constant 0 : index
    %88 = vector.load %arg8[%c0_75, %c1_76, %c0_77, %c0_78] : memref<1x10x20x16xf32, #tpu.memory_space<vmem>>, vector<1x8x2x16xf32>
    tpu.vector_store %arg8[%c0_75, %c1_76, %c0_77, %c0_78], %87 {strides = array<i32>} : memref<1x10x20x16xf32, #tpu.memory_space<vmem>>, vector<1x8x2x16xf32>,
    %cst_79 = arith.constant 0.000000e+00 : f32
    %89 = vector.broadcast %cst_79 : f32 to vector<1x8x2x16xf32>
    %c0_80 = arith.constant 0 : index
    %c1_81 = arith.constant 1 : index
    %c18 = arith.constant 18 : index
    %c0_82 = arith.constant 0 : index
    %90 = vector.load %arg8[%c0_80, %c1_81, %c18, %c0_82] : memref<1x10x20x16xf32, #tpu.memory_space<vmem>>, vector<1x8x2x16xf32>
    tpu.vector_store %arg8[%c0_80, %c1_81, %c18, %c0_82], %89 {strides = array<i32>} : memref<1x10x20x16xf32, #tpu.memory_space<vmem>>, vector<1x8x2x16xf32>,
    %c0_83 = arith.constant 0 : index
    %c1_84 = arith.constant 1 : index
    %c2_85 = arith.constant 2 : index
    %c0_86 = arith.constant 0 : index
    %91 = vector.load %arg8[%c0_83, %c1_84, %c2_85, %c0_86] : memref<1x10x20x16xf32, #tpu.memory_space<vmem>>, vector<1x8x16x16xf32>
    tpu.vector_store %arg8[%c0_83, %c1_84, %c2_85, %c0_86], %82 {strides = array<i32>} : memref<1x10x20x16xf32, #tpu.memory_space<vmem>>, vector<1x8x16x16xf32>,
    %c0_87 = arith.constant 0 : index
    %c0_88 = arith.constant 0 : index
    %c0_89 = arith.constant 0 : index
    %92 = vector.load %arg4[%c0_87, %c0_88, %c0_89] : memref<9x16x32xf32, #tpu.memory_space<vmem>>, vector<9x16x32xf32>
    %c0_90 = arith.constant 0 : index
    %c0_91 = arith.constant 0 : index
    %93 = vector.load %arg5[%c0_90, %c0_91] : memref<1x32xf32, #tpu.memory_space<vmem>>, vector<1x32xf32>
    %cst_92 = arith.constant 0.000000e+00 : f32
    %94 = vector.broadcast %cst_92 : f32 to vector<64x32xf32>
    %c0_93 = arith.constant 0 : index
    %c0_94 = arith.constant 0 : index
    %c0_95 = arith.constant 0 : index
    %c0_96 = arith.constant 0 : index
    %95 = tpu.strided_load %arg8[%c0_93, %c0_94, %c0_95, %c0_96] {strides = array<i32: 1, 1, 2, 1>} : memref<1x10x20x16xf32, #tpu.memory_space<vmem>>, vector<1x10x8x16xf32>
    %c0_97 = arith.constant 0 : index
    %c0_98 = arith.constant 0 : index
    %c1_99 = arith.constant 1 : index
    %c0_100 = arith.constant 0 : index
    %96 = tpu.strided_load %arg8[%c0_97, %c0_98, %c1_99, %c0_100] {strides = array<i32: 1, 1, 2, 1>} : memref<1x10x20x16xf32, #tpu.memory_space<vmem>>, vector<1x10x8x16xf32>
    %97 = arith.maximumf %95, %96 : vector<1x10x8x16xf32>
    %98 = vector.extract_strided_slice %97 {offsets = [0, 0, 0, 0], sizes = [1, 8, 8, 16], strides = [1, 1, 1, 1]} : vector<1x10x8x16xf32> to vector<1x8x8x16xf32>
    %99 = vector.shape_cast %98 : vector<1x8x8x16xf32> to vector<64x16xf32>
    %100 = vector.extract_strided_slice %92 {offsets = [0, 0, 0], sizes = [1, 16, 32], strides = [1, 1, 1]} : vector<9x16x32xf32> to vector<1x16x32xf32>
    %101 = vector.shape_cast %100 : vector<1x16x32xf32> to vector<16x32xf32>
    %cst_101 = arith.constant dense<0.000000e+00> : vector<64x32xf32>
    %102 = tpu.matmul %99, %101, %cst_101 {dimension_numbers = #tpu.dot_dimension_numbers<[1], [0], [0], [1], [0, 0, 1, 1], [], []>} : vector<64x16xf32>, vector<16x32xf32>, vector<64x32xf32> -> vector<64x32xf32>
    %103 = arith.addf %94, %102 : vector<64x32xf32>
    %104 = vector.extract_strided_slice %97 {offsets = [0, 1, 0, 0], sizes = [1, 8, 8, 16], strides = [1, 1, 1, 1]} : vector<1x10x8x16xf32> to vector<1x8x8x16xf32>
    %105 = vector.shape_cast %104 : vector<1x8x8x16xf32> to vector<64x16xf32>
    %106 = vector.extract_strided_slice %92 {offsets = [3, 0, 0], sizes = [1, 16, 32], strides = [1, 1, 1]} : vector<9x16x32xf32> to vector<1x16x32xf32>
    %107 = vector.shape_cast %106 : vector<1x16x32xf32> to vector<16x32xf32>
    %cst_102 = arith.constant dense<0.000000e+00> : vector<64x32xf32>
    %108 = tpu.matmul %105, %107, %cst_102 {dimension_numbers = #tpu.dot_dimension_numbers<[1], [0], [0], [1], [0, 0, 1, 1], [], []>} : vector<64x16xf32>, vector<16x32xf32>, vector<64x32xf32> -> vector<64x32xf32>
    %109 = arith.addf %103, %108 : vector<64x32xf32>
    %110 = vector.extract_strided_slice %97 {offsets = [0, 2, 0, 0], sizes = [1, 8, 8, 16], strides = [1, 1, 1, 1]} : vector<1x10x8x16xf32> to vector<1x8x8x16xf32>
    %111 = vector.shape_cast %110 : vector<1x8x8x16xf32> to vector<64x16xf32>
    %112 = vector.extract_strided_slice %92 {offsets = [6, 0, 0], sizes = [1, 16, 32], strides = [1, 1, 1]} : vector<9x16x32xf32> to vector<1x16x32xf32>
    %113 = vector.shape_cast %112 : vector<1x16x32xf32> to vector<16x32xf32>
    %cst_103 = arith.constant dense<0.000000e+00> : vector<64x32xf32>
    %114 = tpu.matmul %111, %113, %cst_103 {dimension_numbers = #tpu.dot_dimension_numbers<[1], [0], [0], [1], [0, 0, 1, 1], [], []>} : vector<64x16xf32>, vector<16x32xf32>, vector<64x32xf32> -> vector<64x32xf32>
    %115 = arith.addf %109, %114 : vector<64x32xf32>
    %c0_104 = arith.constant 0 : index
    %c0_105 = arith.constant 0 : index
    %c2_106 = arith.constant 2 : index
    %c0_107 = arith.constant 0 : index
    %116 = tpu.strided_load %arg8[%c0_104, %c0_105, %c2_106, %c0_107] {strides = array<i32: 1, 1, 2, 1>} : memref<1x10x20x16xf32, #tpu.memory_space<vmem>>, vector<1x10x8x16xf32>
    %c0_108 = arith.constant 0 : index
    %c0_109 = arith.constant 0 : index
    %c3 = arith.constant 3 : index
    %c0_110 = arith.constant 0 : index
    %117 = tpu.strided_load %arg8[%c0_108, %c0_109, %c3, %c0_110] {strides = array<i32: 1, 1, 2, 1>} : memref<1x10x20x16xf32, #tpu.memory_space<vmem>>, vector<1x10x8x16xf32>
    %118 = arith.maximumf %116, %117 : vector<1x10x8x16xf32>
    %119 = vector.extract_strided_slice %118 {offsets = [0, 0, 0, 0], sizes = [1, 8, 8, 16], strides = [1, 1, 1, 1]} : vector<1x10x8x16xf32> to vector<1x8x8x16xf32>
    %120 = vector.shape_cast %119 : vector<1x8x8x16xf32> to vector<64x16xf32>
    %121 = vector.extract_strided_slice %92 {offsets = [1, 0, 0], sizes = [1, 16, 32], strides = [1, 1, 1]} : vector<9x16x32xf32> to vector<1x16x32xf32>
    %122 = vector.shape_cast %121 : vector<1x16x32xf32> to vector<16x32xf32>
    %cst_111 = arith.constant dense<0.000000e+00> : vector<64x32xf32>
    %123 = tpu.matmul %120, %122, %cst_111 {dimension_numbers = #tpu.dot_dimension_numbers<[1], [0], [0], [1], [0, 0, 1, 1], [], []>} : vector<64x16xf32>, vector<16x32xf32>, vector<64x32xf32> -> vector<64x32xf32>
    %124 = arith.addf %115, %123 : vector<64x32xf32>
    %125 = vector.extract_strided_slice %118 {offsets = [0, 1, 0, 0], sizes = [1, 8, 8, 16], strides = [1, 1, 1, 1]} : vector<1x10x8x16xf32> to vector<1x8x8x16xf32>
    %126 = vector.shape_cast %125 : vector<1x8x8x16xf32> to vector<64x16xf32>
    %127 = vector.extract_strided_slice %92 {offsets = [4, 0, 0], sizes = [1, 16, 32], strides = [1, 1, 1]} : vector<9x16x32xf32> to vector<1x16x32xf32>
    %128 = vector.shape_cast %127 : vector<1x16x32xf32> to vector<16x32xf32>
    %cst_112 = arith.constant dense<0.000000e+00> : vector<64x32xf32>
    %129 = tpu.matmul %126, %128, %cst_112 {dimension_numbers = #tpu.dot_dimension_numbers<[1], [0], [0], [1], [0, 0, 1, 1], [], []>} : vector<64x16xf32>, vector<16x32xf32>, vector<64x32xf32> -> vector<64x32xf32>
    %130 = arith.addf %124, %129 : vector<64x32xf32>
    %131 = vector.extract_strided_slice %118 {offsets = [0, 2, 0, 0], sizes = [1, 8, 8, 16], strides = [1, 1, 1, 1]} : vector<1x10x8x16xf32> to vector<1x8x8x16xf32>
    %132 = vector.shape_cast %131 : vector<1x8x8x16xf32> to vector<64x16xf32>
    %133 = vector.extract_strided_slice %92 {offsets = [7, 0, 0], sizes = [1, 16, 32], strides = [1, 1, 1]} : vector<9x16x32xf32> to vector<1x16x32xf32>
    %134 = vector.shape_cast %133 : vector<1x16x32xf32> to vector<16x32xf32>
    %cst_113 = arith.constant dense<0.000000e+00> : vector<64x32xf32>
    %135 = tpu.matmul %132, %134, %cst_113 {dimension_numbers = #tpu.dot_dimension_numbers<[1], [0], [0], [1], [0, 0, 1, 1], [], []>} : vector<64x16xf32>, vector<16x32xf32>, vector<64x32xf32> -> vector<64x32xf32>
    %136 = arith.addf %130, %135 : vector<64x32xf32>
    %c0_114 = arith.constant 0 : index
    %c0_115 = arith.constant 0 : index
    %c4 = arith.constant 4 : index
    %c0_116 = arith.constant 0 : index
    %137 = tpu.strided_load %arg8[%c0_114, %c0_115, %c4, %c0_116] {strides = array<i32: 1, 1, 2, 1>} : memref<1x10x20x16xf32, #tpu.memory_space<vmem>>, vector<1x10x8x16xf32>
    %c0_117 = arith.constant 0 : index
    %c0_118 = arith.constant 0 : index
    %c5 = arith.constant 5 : index
    %c0_119 = arith.constant 0 : index
    %138 = tpu.strided_load %arg8[%c0_117, %c0_118, %c5, %c0_119] {strides = array<i32: 1, 1, 2, 1>} : memref<1x10x20x16xf32, #tpu.memory_space<vmem>>, vector<1x10x8x16xf32>
    %139 = arith.maximumf %137, %138 : vector<1x10x8x16xf32>
    %140 = vector.extract_strided_slice %139 {offsets = [0, 0, 0, 0], sizes = [1, 8, 8, 16], strides = [1, 1, 1, 1]} : vector<1x10x8x16xf32> to vector<1x8x8x16xf32>
    %141 = vector.shape_cast %140 : vector<1x8x8x16xf32> to vector<64x16xf32>
    %142 = vector.extract_strided_slice %92 {offsets = [2, 0, 0], sizes = [1, 16, 32], strides = [1, 1, 1]} : vector<9x16x32xf32> to vector<1x16x32xf32>
    %143 = vector.shape_cast %142 : vector<1x16x32xf32> to vector<16x32xf32>
    %cst_120 = arith.constant dense<0.000000e+00> : vector<64x32xf32>
    %144 = tpu.matmul %141, %143, %cst_120 {dimension_numbers = #tpu.dot_dimension_numbers<[1], [0], [0], [1], [0, 0, 1, 1], [], []>} : vector<64x16xf32>, vector<16x32xf32>, vector<64x32xf32> -> vector<64x32xf32>
    %145 = arith.addf %136, %144 : vector<64x32xf32>
    %146 = vector.extract_strided_slice %139 {offsets = [0, 1, 0, 0], sizes = [1, 8, 8, 16], strides = [1, 1, 1, 1]} : vector<1x10x8x16xf32> to vector<1x8x8x16xf32>
    %147 = vector.shape_cast %146 : vector<1x8x8x16xf32> to vector<64x16xf32>
    %148 = vector.extract_strided_slice %92 {offsets = [5, 0, 0], sizes = [1, 16, 32], strides = [1, 1, 1]} : vector<9x16x32xf32> to vector<1x16x32xf32>
    %149 = vector.shape_cast %148 : vector<1x16x32xf32> to vector<16x32xf32>
    %cst_121 = arith.constant dense<0.000000e+00> : vector<64x32xf32>
    %150 = tpu.matmul %147, %149, %cst_121 {dimension_numbers = #tpu.dot_dimension_numbers<[1], [0], [0], [1], [0, 0, 1, 1], [], []>} : vector<64x16xf32>, vector<16x32xf32>, vector<64x32xf32> -> vector<64x32xf32>
    %151 = arith.addf %145, %150 : vector<64x32xf32>
    %152 = vector.extract_strided_slice %139 {offsets = [0, 2, 0, 0], sizes = [1, 8, 8, 16], strides = [1, 1, 1, 1]} : vector<1x10x8x16xf32> to vector<1x8x8x16xf32>
    %153 = vector.shape_cast %152 : vector<1x8x8x16xf32> to vector<64x16xf32>
    %154 = vector.extract_strided_slice %92 {offsets = [8, 0, 0], sizes = [1, 16, 32], strides = [1, 1, 1]} : vector<9x16x32xf32> to vector<1x16x32xf32>
    %155 = vector.shape_cast %154 : vector<1x16x32xf32> to vector<16x32xf32>
    %cst_122 = arith.constant dense<0.000000e+00> : vector<64x32xf32>
    %156 = tpu.matmul %153, %155, %cst_122 {dimension_numbers = #tpu.dot_dimension_numbers<[1], [0], [0], [1], [0, 0, 1, 1], [], []>} : vector<64x16xf32>, vector<16x32xf32>, vector<64x32xf32> -> vector<64x32xf32>
    %157 = arith.addf %151, %156 : vector<64x32xf32>
    %158 = vector.broadcast %93 : vector<1x32xf32> to vector<64x32xf32>
    %159 = arith.addf %157, %158 : vector<64x32xf32>
    %cst_123 = arith.constant 0.000000e+00 : f32
    %160 = vector.broadcast %cst_123 : f32 to vector<64x32xf32>
    %161 = arith.maximumf %159, %160 : vector<64x32xf32>
    %162 = vector.shape_cast %161 : vector<64x32xf32> to vector<1x8x8x32xf32>
    %163 = vector.shape_cast %162 : vector<1x8x8x32xf32> to vector<1x4x2x8x32xf32>
    %cst_124 = arith.constant dense<0xFF800000> : vector<1x4x8x32xf32>
    %164 = vector.multi_reduction <maximumf>, %163, %cst_124 [2] : vector<1x4x2x8x32xf32> to vector<1x4x8x32xf32>
    %c0_125 = arith.constant 0 : index
    %c0_126 = arith.constant 0 : index
    %c0_127 = arith.constant 0 : index
    %c0_128 = arith.constant 0 : index
    %165 = vector.load %arg9[%c0_125, %c0_126, %c0_127, %c0_128] : memref<1x4x8x32xf32, #tpu.memory_space<vmem>>, vector<1x4x8x32xf32>
    tpu.vector_store %arg9[%c0_125, %c0_126, %c0_127, %c0_128], %164 {strides = array<i32>} : memref<1x4x8x32xf32, #tpu.memory_space<vmem>>, vector<1x4x8x32xf32>,
    %c0_129 = arith.constant 0 : index
    %c0_130 = arith.constant 0 : index
    %c0_131 = arith.constant 0 : index
    %c0_132 = arith.constant 0 : index
    %166 = tpu.strided_load %arg9[%c0_129, %c0_130, %c0_131, %c0_132] {strides = array<i32: 1, 1, 2, 1>} : memref<1x4x8x32xf32, #tpu.memory_space<vmem>>, vector<1x4x4x32xf32>
    %c0_133 = arith.constant 0 : index
    %c0_134 = arith.constant 0 : index
    %c1_135 = arith.constant 1 : index
    %c0_136 = arith.constant 0 : index
    %167 = tpu.strided_load %arg9[%c0_133, %c0_134, %c1_135, %c0_136] {strides = array<i32: 1, 1, 2, 1>} : memref<1x4x8x32xf32, #tpu.memory_space<vmem>>, vector<1x4x4x32xf32>
    %168 = arith.maximumf %166, %167 : vector<1x4x4x32xf32>
    %c0_137 = arith.constant 0 : index
    %c0_138 = arith.constant 0 : index
    %c0_139 = arith.constant 0 : index
    %c0_140 = arith.constant 0 : index
    %169 = vector.load %arg6[%c0_137, %c0_138, %c0_139, %c0_140] : memref<1x4x4x32xf32, #tpu.memory_space<vmem>>, vector<1x4x4x32xf32>
    tpu.vector_store %arg6[%c0_137, %c0_138, %c0_139, %c0_140], %168 {strides = array<i32>} : memref<1x4x4x32xf32, #tpu.memory_space<vmem>>, vector<1x4x4x32xf32>,
    return
  }
  func.func @transform_0(%arg0: i32) -> (i32, i32, i32, i32) {
    %c0_i32 = arith.constant 0 : i32
    %c0_i32_0 = arith.constant 0 : i32
    %c0_i32_1 = arith.constant 0 : i32
    %c0_i32_2 = arith.constant 0 : i32
    return %arg0, %c0_i32, %c0_i32_0, %c0_i32_1 : i32, i32, i32, i32
  }
  func.func @transform_1(%arg0: i32) -> (i32, i32) {
    %c0_i32 = arith.constant 0 : i32
    %c0_i32_0 = arith.constant 0 : i32
    %c0_i32_1 = arith.constant 0 : i32
    return %c0_i32, %c0_i32_0 : i32, i32
  }
  func.func @transform_2(%arg0: i32) -> (i32, i32) {
    %c0_i32 = arith.constant 0 : i32
    %c0_i32_0 = arith.constant 0 : i32
    %c0_i32_1 = arith.constant 0 : i32
    return %c0_i32, %c0_i32_0 : i32, i32
  }
  func.func @transform_3(%arg0: i32) -> (i32, i32, i32) {
    %c0_i32 = arith.constant 0 : i32
    %c0_i32_0 = arith.constant 0 : i32
    %c0_i32_1 = arith.constant 0 : i32
    %c0_i32_2 = arith.constant 0 : i32
    return %c0_i32, %c0_i32_0, %c0_i32_1 : i32, i32, i32
  }
  func.func @transform_4(%arg0: i32) -> (i32, i32) {
    %c0_i32 = arith.constant 0 : i32
    %c0_i32_0 = arith.constant 0 : i32
    %c0_i32_1 = arith.constant 0 : i32
    return %c0_i32, %c0_i32_0 : i32, i32
  }
  func.func @transform_5(%arg0: i32) -> (i32, i32, i32, i32) {
    %c0_i32 = arith.constant 0 : i32
    %c0_i32_0 = arith.constant 0 : i32
    %c0_i32_1 = arith.constant 0 : i32
    %c0_i32_2 = arith.constant 0 : i32
    return %arg0, %c0_i32, %c0_i32_0, %c0_i32_1 : i32, i32, i32, i32
  }
}

</mosaic_0001>

<bundles_post_ra>
// kernel: client_model_forward.1
= control target key start
LH: loop header
LB: loop body
LE: loop exit
PB: predicated region body
PF: predicated region fallthrough
CT: control target
= control target key end

     0   :  { %s3378_s18 = smov 0   ;;  %s4412_s0 = inlined_call_operand.vmem [shape: f32[2,16,16,1], index: 0, kind: input, shape index: {}]   ;;  %s4413_s1 = inlined_call_operand.vmem [shape: f32[9,16], index: 1, kind: input, shape index: {}]   ;;  %s4414_s2 = inlined_call_operand.vmem [shape: f32[1,16], index: 2, kind: input, shape index: {}]   ;;  %s4415_s3 = inlined_call_operand.vmem [shape: f32[9,16,32], index: 3, kind: input, shape index: {}]   ;;  %s4416_s4 = inlined_call_operand.vmem [shape: f32[1,32], index: 4, kind: input, shape index: {}]   ;;  %s4417_s5 = inlined_call_operand.vmem [shape: f32[2,4,4,32], index: 5, kind: output, shape index: {}]  }
   0x1 LB: > { %s2900_s19 = sadd.s32 4294967295, %s3344_s18   ;;  %p2904_p0 = scmp.ge.s32.totalorder %s3344_s18, 1  ;;  %s3344_s18 = sphi %s3378_s18, %s15_s18  }
   0x2   : > { %p187_p1 = scmp.lt.s32.totalorder %s3344_s18, 3 }
   0x4   : > { %p188_p2 = pnand %p2904_p0, %p187_p1 }
   0x5   : > { %p3388_p3 = scmp.lt.s32.totalorder (!%p188_p2), %s2900_s19, 1  ;;  %vm225_vm0 = vcmask (!%p188_p2), 130048   ;;  %vm235_vm1 = vcmask (!%p188_p2), 122880   ;;  %v3346_v0 = vmov (!%p188_p2), 0   ;;  %v4418_v1 = vmov (!%p188_p2), 0.0   ;;  %v1529_v34 = vld [vmem:[%s4415_s3 + $0x30] sm:$0xff] (!%p188_p2) }
   0x6   : > { %191 = sbr.rel (%p188_p2) target bundleno = 624 (0x270), region = 40  ;;  %3335 = vset.pattern.permute.xlu1 (!%p188_p2), %v3346_v0  ;;  %3334 = vset.pattern.permute.xlu0 (!%p188_p2), %v3346_v0  ;;  %237 = vst.msk [vmem:[#allocation2 + $0x30] sm:$0x1] (!%p188_p2), %vm235_vm1, %v4418_v1  ;;  %236 = vst.msk [vmem:[#allocation2 + $0x18] sm:$0x1] (!%p188_p2), %vm235_vm1, %v4418_v1  ;;  %vm228_vm2 = vcmask (!%p188_p2), 123904   ;;  %v527_v40 = vlaneseq (!%p188_p2) }
   0x7   : > { %226 = vst.msk [vmem:[#allocation2] sm:$0xff] (!%p188_p2), %vm225_vm0, %v4418_v1  ;;  %227 = vst.msk [vmem:[#allocation2 + $0x8] sm:$0xff] (!%p188_p2), %vm225_vm0, %v4418_v1  ;;  %v1530_v35 = vld [vmem:[%s4415_s3 + $0x38] sm:$0xff] (!%p188_p2)  ;;  %v1531_v36 = vld [vmem:[%s4415_s3 + $0x40] sm:$0xff] (!%p188_p2)  ;;  %vm1484_vm3 = vcmask (!%p188_p2), 125952   ;;  %vm2804_vm4 = vcmask (!%p188_p2), 261120  }
   0x8   : > { %231 = vst.msk [vmem:[#allocation2 + $0x198] sm:$0xff] (!%p188_p2), %vm225_vm0, %v4418_v1  ;;  %232 = vst.msk [vmem:[#allocation2 + $0x1a0] sm:$0xff] (!%p188_p2), %vm225_vm0, %v4418_v1  ;;  %v3222_v37 = vpack.c.bf16 (!%p188_p2), %v1530_v35, %v1529_v34  ;;  %v1532_v38 = vld [vmem:[%s4415_s3 + $0x48] sm:$0xff] (!%p188_p2)  ;;  %v528_v41 = vshrl.u32 (!%p188_p2), %v527_v40, 7  ;;  %v492_v44 = vld [vmem:[%s4413_s1] sm:$0xff] (!%p188_p2)  ;;  %vm2840_vm5 = vcmask (!%p188_p2), 257024  }
   0x9   : > { %238 = vst.msk [vmem:[#allocation2 + $0x48] sm:$0x1] (!%p188_p2), %vm235_vm1, %v4418_v1  ;;  %239 = vst.msk [vmem:[#allocation2 + $0x60] sm:$0x1] (!%p188_p2), %vm235_vm1, %v4418_v1  ;;  %v3564_v39 = vpack.c.bf16 (!%p188_p2), %v1532_v38, %v1531_v36 }
   0xa   : > { %240 = vst.msk [vmem:[#allocation2 + $0x78] sm:$0x1] (!%p188_p2), %vm235_vm1, %v4418_v1  ;;  %241 = vst.msk [vmem:[#allocation2 + $0x90] sm:$0x1] (!%p188_p2), %vm235_vm1, %v4418_v1  ;;  %3223 = vmatprep.subr.bf16.mxu1 (!%p188_p2), %v3222_v37  ;;  %v529_v42 = vsub.s32 (!%p188_p2), 0, %v528_v41  ;;  %v597_v43 = vsub.s32 (!%p188_p2), 1, %v528_v41 }
   0xb   : > { %242 = vst.msk [vmem:[#allocation2 + $0xa8] sm:$0x1] (!%p188_p2), %vm235_vm1, %v4418_v1  ;;  %243 = vst.msk [vmem:[#allocation2 + $0xc0] sm:$0x1] (!%p188_p2), %vm235_vm1, %v4418_v1  ;;  %3239 = vmatprep.subr.bf16.mxu0 (!%p188_p2), %v3564_v39  ;;  %3225 = vmatpush3.bf16.msra.mxu1 (!%p188_p2), %v3222_v37  ;;  %v697_v47 = vsub.s32 (!%p188_p2), 2, %v528_v41  ;;  %v797_v60 = vsub.s32 (!%p188_p2), 3, %v528_v41 }
   0xc   : > { %244 = vst.msk [vmem:[#allocation2 + $0xd8] sm:$0x1] (!%p188_p2), %vm235_vm1, %v4418_v1  ;;  %245 = vst.msk [vmem:[#allocation2 + $0xf0] sm:$0x1] (!%p188_p2), %vm235_vm1, %v4418_v1  ;;  %3241 = vmatpush3.bf16.msra.mxu0 (!%p188_p2), %v3564_v39  ;;  %v3571_v45 = vrot.slane (!%p188_p2), %v492_v44, %v529_v42  ;;  %v3573_v46 = vrot.slane (!%p188_p2), %v492_v44, %v597_v43  ;;  %v897_v61 = vsub.s32 (!%p188_p2), 4, %v528_v41  ;;  %v1098_v62 = vsub.s32 (!%p188_p2), 6, %v528_v41 }
   0xd   : > { %246 = vst.msk [vmem:[#allocation2 + $0x108] sm:$0x1] %vm235_vm1, %v4418_v1  ;;  %247 = vst.msk [vmem:[#allocation2 + $0x120] sm:$0x1] %vm235_vm1, %v4418_v1  ;;  %s4426_s19 = smov (!%p3388_p3, %s2900_s19), 1  ;;  %v3578_v56 = vrot.slane %v492_v44, %v697_v47  ;;  %v1198_v0 = vsub.s32 7, %v528_v41 }
   0xe   : > { %248 = vst.msk [vmem:[#allocation2 + $0x138] sm:$0x1] %vm235_vm1, %v4418_v1  ;;  %249 = vst.msk [vmem:[#allocation2 + $0x150] sm:$0x1] %vm235_vm1, %v4418_v1  ;;  %s2986_s21 = sshll.u32 %s4426_s19, 8  ;;  %v495_v48 = vld [vmem:[#allocation2] sm:$0xff] }
   0xf   : > { %250 = vst.msk [vmem:[#allocation2 + $0x168] sm:$0x1] %vm235_vm1, %v4418_v1  ;;  %251 = vst.msk [vmem:[#allocation2 + $0x180] sm:$0x1] %vm235_vm1, %v4418_v1  ;;  %s3482_s24 = scalar_lea.vmem %s4412_s0, %s2986_s21  ;;  %v563_v49 = vld [vmem:[#allocation2 + $0x1] sm:$0xff]  ;;  %v531_v54 = vmul.f32 %v3571_v45, %v495_v48  ;;  %s2987_s27 = sshll.u32 %s4426_s19, 4 }
  0x10   : > { %252 = vst.msk [vmem:[#allocation2 + $0x29] sm:$0x1] %vm235_vm1, %v4418_v1  ;;  %253 = vst.msk [vmem:[#allocation2 + $0x41] sm:$0x1] %vm235_vm1, %v4418_v1  ;;  %v270_v2 = vld [vmem:[%s3482_s24 + $0x10] sm:$0xff]  ;;  %v268_v3 = vld [vmem:[%s3482_s24] sm:$0xff]  ;;  %v599_v55 = vmul.f32 %v3573_v46, %v563_v49  ;;  %s224_s30 = scalar_lea.vmem %s4417_s5, %s2987_s27 }
  0x11   : > { %254 = vst.msk [vmem:[#allocation2 + $0x59] sm:$0x1] %vm235_vm1, %v4418_v1  ;;  %255 = vst.msk [vmem:[#allocation2 + $0x71] sm:$0x1] %vm235_vm1, %v4418_v1  ;;  %312 = vperm.xlu1 %3335, %v270_v2   ;;  %302 = vperm.xlu0 %3334, %v268_v3   ;;  %v271_v4 = vld [vmem:[%s3482_s24 + $0x18] sm:$0xff]  ;;  %v269_v5 = vld [vmem:[%s3482_s24 + $0x8] sm:$0xff] }
  0x12   : > { %256 = vst.msk [vmem:[#allocation2 + $0x89] sm:$0x1] %vm235_vm1, %v4418_v1  ;;  %257 = vst.msk [vmem:[#allocation2 + $0xa1] sm:$0x1] %vm235_vm1, %v4418_v1  ;;  %v273_v6 = vld [vmem:[%s3482_s24 + $0x28] sm:$0xff]  ;;  %v272_v7 = vld [vmem:[%s3482_s24 + $0x20] sm:$0xff] }
  0x13   : > { %258 = vst.msk [vmem:[#allocation2 + $0xb9] sm:$0x1] %vm235_vm1, %v4418_v1  ;;  %259 = vst.msk [vmem:[#allocation2 + $0xd1] sm:$0x1] %vm235_vm1, %v4418_v1  ;;  %v275_v8 = vld [vmem:[%s3482_s24 + $0x38] sm:$0xff]  ;;  %v274_v9 = vld [vmem:[%s3482_s24 + $0x30] sm:$0xff] }
  0x14   : > { %260 = vst.msk [vmem:[#allocation2 + $0xe9] sm:$0x1] %vm235_vm1, %v4418_v1  ;;  %261 = vst.msk [vmem:[#allocation2 + $0x101] sm:$0x1] %vm235_vm1, %v4418_v1  ;;  %v277_v10 = vld [vmem:[%s3482_s24 + $0x48] sm:$0xff]  ;;  %v276_v11 = vld [vmem:[%s3482_s24 + $0x40] sm:$0xff] }
  0x15   : > { %262 = vst.msk [vmem:[#allocation2 + $0x119] sm:$0x1] %vm235_vm1, %v4418_v1  ;;  %263 = vst.msk [vmem:[#allocation2 + $0x131] sm:$0x1] %vm235_vm1, %v4418_v1  ;;  %317 = vperm.xlu1 %3335, %v271_v4   ;;  %307 = vperm.xlu0 %3334, %v269_v5   ;;  %v279_v12 = vld [vmem:[%s3482_s24 + $0x58] sm:$0xff]  ;;  %v278_v13 = vld [vmem:[%s3482_s24 + $0x50] sm:$0xff]  ;;  %v631_v4 = vadd.f32 %v599_v55, %v531_v54 }
  0x16   : > { %264 = vst.msk [vmem:[#allocation2 + $0x149] sm:$0x1] %vm235_vm1, %v4418_v1  ;;  %265 = vst.msk [vmem:[#allocation2 + $0x161] sm:$0x1] %vm235_vm1, %v4418_v1  ;;  %v281_v14 = vld [vmem:[%s3482_s24 + $0x68] sm:$0xff]  ;;  %v280_v15 = vld [vmem:[%s3482_s24 + $0x60] sm:$0xff] }
  0x17   : > { %266 = vst.msk [vmem:[#allocation2 + $0x179] sm:$0x1] %vm235_vm1, %v4418_v1  ;;  %267 = vst.msk [vmem:[#allocation2 + $0x191] sm:$0x1] %vm235_vm1, %v4418_v1  ;;  %v283_v16 = vld [vmem:[%s3482_s24 + $0x78] sm:$0xff]  ;;  %v282_v17 = vld [vmem:[%s3482_s24 + $0x70] sm:$0xff] }
  0x18   : > { %1482 = vst.msk [vmem:[#allocation3] sm:$0xff] %vm225_vm0, %v4418_v1  ;;  %1483 = vst.msk [vmem:[#allocation3 + $0x8] sm:$0xff] %vm225_vm0, %v4418_v1  ;;  %v285_v18 = vld [vmem:[%s3482_s24 + $0x88] sm:$0xff]  ;;  %v284_v19 = vld [vmem:[%s3482_s24 + $0x80] sm:$0xff] }
  0x19   : > { %1487 = vst.msk [vmem:[#allocation3 + $0xd8] sm:$0xff] %vm225_vm0, %v4418_v1  ;;  %1488 = vst.msk [vmem:[#allocation3 + $0xe0] sm:$0xff] %vm225_vm0, %v4418_v1  ;;  %327 = vperm.xlu1 %3335, %v273_v6   ;;  %322 = vperm.xlu0 %3334, %v272_v7   ;;  %v287_v20 = vld [vmem:[%s3482_s24 + $0x98] sm:$0xff]  ;;  %v286_v21 = vld [vmem:[%s3482_s24 + $0x90] sm:$0xff]  ;;  %v997_v6 = vsub.s32 5, %v528_v41 }
  0x1a   : > { %229 = vst.msk [vmem:[#allocation2 + $0x10] sm:$0x3] %vm228_vm2, %v4418_v1  ;;  %233 = vst.msk [vmem:[#allocation2 + $0x1a8] sm:$0x3] %vm228_vm2, %v4418_v1  ;;  %v289_v22 = vld [vmem:[%s3482_s24 + $0xa8] sm:$0xff]  ;;  %v288_v23 = vld [vmem:[%s3482_s24 + $0xa0] sm:$0xff] }
  0x1b   : > { %1491 = vst.msk [vmem:[#allocation3 + $0x18] sm:$0x3] %vm228_vm2, %v4418_v1  ;;  %1492 = vst.msk [vmem:[#allocation3 + $0x30] sm:$0x3] %vm228_vm2, %v4418_v1  ;;  %v291_v24 = vld [vmem:[%s3482_s24 + $0xb8] sm:$0xff]  ;;  %v290_v25 = vld [vmem:[%s3482_s24 + $0xb0] sm:$0xff] }
  0x1c   : > { %1493 = vst.msk [vmem:[#allocation3 + $0x48] sm:$0x3] %vm228_vm2, %v4418_v1  ;;  %1494 = vst.msk [vmem:[#allocation3 + $0x60] sm:$0x3] %vm228_vm2, %v4418_v1  ;;  %v293_v26 = vld [vmem:[%s3482_s24 + $0xc8] sm:$0xff]  ;;  %v292_v27 = vld [vmem:[%s3482_s24 + $0xc0] sm:$0xff] }
  0x1d   : > { %1495 = vst.msk [vmem:[#allocation3 + $0x78] sm:$0x3] %vm228_vm2, %v4418_v1  ;;  %1496 = vst.msk [vmem:[#allocation3 + $0x90] sm:$0x3] %vm228_vm2, %v4418_v1  ;;  %337 = vperm.xlu1 %3335, %v275_v8   ;;  %332 = vperm.xlu0 %3334, %v274_v9   ;;  %v295_v28 = vld [vmem:[%s3482_s24 + $0xd8] sm:$0xff]  ;;  %v294_v29 = vld [vmem:[%s3482_s24 + $0xd0] sm:$0xff]  ;;  %v3587_v9 = vrot.slane %v492_v44, %v797_v60 }
  0x1e   : > { %1497 = vst.msk [vmem:[#allocation3 + $0xa8] sm:$0x3] %vm228_vm2, %v4418_v1  ;;  %1498 = vst.msk [vmem:[#allocation3 + $0xc0] sm:$0x3] %vm228_vm2, %v4418_v1  ;;  %v297_v30 = vld [vmem:[%s3482_s24 + $0xe8] sm:$0xff]  ;;  %v296_v31 = vld [vmem:[%s3482_s24 + $0xe0] sm:$0xff] }
  0x1f   : > { %1499 = vst.msk [vmem:[#allocation3 + $0x2a] sm:$0x3] %vm228_vm2, %v4418_v1  ;;  %1500 = vst.msk [vmem:[#allocation3 + $0x42] sm:$0x3] %vm228_vm2, %v4418_v1  ;;  %v299_v32 = vld [vmem:[%s3482_s24 + $0xf8] sm:$0xff]  ;;  %v298_v33 = vld [vmem:[%s3482_s24 + $0xf0] sm:$0xff] }
  0x20   : > { %1501 = vst.msk [vmem:[#allocation3 + $0x5a] sm:$0x3] %vm228_vm2, %v4418_v1  ;;  %1502 = vst.msk [vmem:[#allocation3 + $0x72] sm:$0x3] %vm228_vm2, %v4418_v1  ;;  %v496_v50 = vld [vmem:[#allocation2 + $0x8] sm:$0xff] }
  0x21   : > { %1503 = vst.msk [vmem:[#allocation3 + $0x8a] sm:$0x3] %vm228_vm2, %v4418_v1  ;;  %1504 = vst.msk [vmem:[#allocation3 + $0xa2] sm:$0x3] %vm228_vm2, %v4418_v1  ;;  %347 = vperm.xlu1 %3335, %v277_v10   ;;  %342 = vperm.xlu0 %3334, %v276_v11   ;;  %v564_v51 = vld [vmem:[#allocation2 + $0x9] sm:$0xff]  ;;  %v532_v58 = vmul.f32 %v3571_v45, %v496_v50  ;;  %v3589_v10 = vrot.slane %v492_v44, %v897_v61 }
  0x22   : > { %1505 = vst.msk [vmem:[#allocation3 + $0xba] sm:$0x3] %vm228_vm2, %v4418_v1  ;;  %1506 = vst.msk [vmem:[#allocation3 + $0xd2] sm:$0x3] %vm228_vm2, %v4418_v1  ;;  %v663_v57 = vld [vmem:[#allocation2 + $0x2] sm:$0xff]  ;;  %v600_v59 = vmul.f32 %v3573_v46, %v564_v51  ;;  %v664_v63 = vld [vmem:[#allocation2 + $0xa] sm:$0xff]  ;;  %v3591_v11 = vrot.slane %v492_v44, %v1098_v62 }
  0x23   : > { %v699_v5 = vmul.f32 %v3578_v56, %v663_v57  ;;  %v700_v8 = vmul.f32 %v3578_v56, %v664_v63  ;;  %v3620_v41 = vld [vmem:[%s4413_s1 + $0x8] ss:$0 sm:$0xff] }
  0x24   : > { %v632_v7 = vadd.f32 %v600_v59, %v532_v58 }
  0x25   : > { %357 = vperm.xlu1 %3335, %v279_v12   ;;  %352 = vperm.xlu0 %3334, %v278_v13   ;;  %v3593_v12 = vrot.slane %v492_v44, %v1198_v0 }
  0x29   : > { %367 = vperm.xlu1 %3335, %v281_v14   ;;  %362 = vperm.xlu0 %3334, %v280_v15  }
  0x2d   : > { %377 = vperm.xlu1 %3335, %v283_v16   ;;  %372 = vperm.xlu0 %3334, %v282_v17  }
  0x31   : > { %387 = vperm.xlu1 %3335, %v285_v18   ;;  %382 = vperm.xlu0 %3334, %v284_v19  }
  0x35   : > { %397 = vperm.xlu1 %3335, %v287_v20   ;;  %392 = vperm.xlu0 %3334, %v286_v21   ;;  %v731_v20 = vadd.f32 %v699_v5, %v631_v4 }
  0x39   : > { %407 = vperm.xlu1 %3335, %v289_v22   ;;  %402 = vperm.xlu0 %3334, %v288_v23  }
  0x3d   : > { %417 = vperm.xlu1 %3335, %v291_v24   ;;  %412 = vperm.xlu0 %3334, %v290_v25   ;;  %v3601_v24 = vrot.slane %v492_v44, %v997_v6  ;;  %v732_v25 = vadd.f32 %v700_v8, %v632_v7 }
  0x41   : > { %427 = vperm.xlu1 %3335, %v293_v26   ;;  %422 = vperm.xlu0 %3334, %v292_v27  }
  0x45   : > { %437 = vperm.xlu1 %3335, %v295_v28   ;;  %432 = vperm.xlu0 %3334, %v294_v29  }
  0x49   : > { %447 = vperm.xlu1 %3335, %v297_v30   ;;  %442 = vperm.xlu0 %3334, %v296_v31  }
  0x4d   : > { %457 = vperm.xlu1 %3335, %v299_v32   ;;  %452 = vperm.xlu0 %3334, %v298_v33  }
  0x90   : > { %v313_v52 = vpop.permute.xlu1 %312  ;;  %v303_v53 = vpop.permute.xlu0 %302 }
  0x91   : > { %462 = vst.msk [vmem:[#allocation2 + $0x31] sm:$0xff] %vm225_vm0, %v313_v52  ;;  %460 = vst.msk [vmem:[#allocation2 + $0x19] sm:$0xff] %vm225_vm0, %v303_v53 }
  0x94   : > { %v318_v2 = vpop.permute.xlu1 %317  ;;  %v308_v3 = vpop.permute.xlu0 %307 }
  0x95   : > { %463 = vst.msk [vmem:[#allocation2 + $0x39] sm:$0xff] %vm225_vm0, %v318_v2  ;;  %461 = vst.msk [vmem:[#allocation2 + $0x21] sm:$0xff] %vm225_vm0, %v308_v3 }
  0x98   : > { %v499_v13 = vld [vmem:[#allocation2 + $0x30] sm:$0xff]  ;;  %v497_v15 = vld [vmem:[#allocation2 + $0x18] sm:$0xff]  ;;  %v328_v16 = vpop.permute.xlu1 %327  ;;  %v323_v17 = vpop.permute.xlu0 %322 }
  0x99   : > { %v567_v14 = vld [vmem:[#allocation2 + $0x31] sm:$0xff]  ;;  %v535_v18 = vmul.f32 %v3571_v45, %v499_v13  ;;  %v565_v21 = vld [vmem:[#allocation2 + $0x19] sm:$0xff]  ;;  %465 = vst.msk [vmem:[#allocation2 + $0x51] sm:$0xff] %vm225_vm0, %v328_v16  ;;  %464 = vst.msk [vmem:[#allocation2 + $0x49] sm:$0xff] %vm225_vm0, %v323_v17  ;;  %v533_v22 = vmul.f32 %v3571_v45, %v497_v15  ;;  %v3604_v26 = vmul.f32 %v3587_v9, %v499_v13 }
  0x9a   : > { %v603_v19 = vmul.f32 %v3573_v46, %v567_v14  ;;  %v601_v23 = vmul.f32 %v3573_v46, %v565_v21  ;;  %v3607_v27 = vmul.f32 %v3589_v10, %v567_v14  ;;  %v3610_v28 = vmul.f32 %v3591_v11, %v499_v13 }
  0x9b   : > { %v799_v29 = vmul.f32 %v3587_v9, %v497_v15  ;;  %v3614_v31 = vmul.f32 %v3593_v12, %v567_v14  ;;  %v899_v33 = vmul.f32 %v3589_v10, %v565_v21 }
  0x9c   : > { %v635_v30 = vadd.f32 %v603_v19, %v535_v18  ;;  %v633_v32 = vadd.f32 %v601_v23, %v533_v22  ;;  %v500_v34 = vld [vmem:[#allocation2 + $0x38] sm:$0xff]  ;;  %v338_v37 = vpop.permute.xlu1 %337  ;;  %v333_v38 = vpop.permute.xlu0 %332  ;;  %v498_v52 = vld [vmem:[#allocation2 + $0x20] sm:$0xff] }
  0x9d   : > { %v568_v35 = vld [vmem:[#allocation2 + $0x39] sm:$0xff]  ;;  %v831_v40 = vadd.f32 %v799_v29, %v731_v20  ;;  %v536_v42 = vmul.f32 %v3571_v45, %v500_v34  ;;  %467 = vst.msk [vmem:[#allocation2 + $0x69] sm:$0xff] %vm225_vm0, %v338_v37  ;;  %466 = vst.msk [vmem:[#allocation2 + $0x61] sm:$0xff] %vm225_vm0, %v333_v38  ;;  %v802_v49 = vmul.f32 %v3587_v9, %v500_v34  ;;  %v566_v53 = vld [vmem:[#allocation2 + $0x21] sm:$0xff] }
  0x9e   : > { %v667_v36 = vld [vmem:[#allocation2 + $0x32] sm:$0xff]  ;;  %v604_v43 = vmul.f32 %v3573_v46, %v568_v35  ;;  %v668_v44 = vld [vmem:[#allocation2 + $0x3a] sm:$0xff]  ;;  %v902_v50 = vmul.f32 %v3589_v10, %v568_v35  ;;  %v666_v60 = vld [vmem:[#allocation2 + $0x22] sm:$0xff]  ;;  %v1101_v61 = vmul.f32 %v3591_v11, %v500_v34  ;;  %v3638_v62 = vmul.f32 %v3593_v12, %v568_v35 }
  0x9f   : > { %v703_v47 = vmul.f32 %v3578_v56, %v667_v36  ;;  %v704_v48 = vmul.f32 %v3578_v56, %v668_v44  ;;  %v1001_v51 = vmul.f32 %v3601_v24, %v667_v36  ;;  %v665_v54 = vld [vmem:[#allocation2 + $0x1a] sm:$0xff]  ;;  %v931_v55 = vadd.f32 %v899_v33, %v831_v40 }
  0xa0   : > { %v636_v57 = vadd.f32 %v604_v43, %v536_v42  ;;  %v3634_v59 = vmul.f32 %v3601_v24, %v668_v44  ;;  %v1300_v63 = vmul.f32 %v3620_v41, %v667_v36  ;;  %v3642_v0 = vmul.f32 %v3620_v41, %v668_v44  ;;  %v570_v2 = vld [vmem:[#allocation2 + $0x51] sm:$0xff]  ;;  %v348_v3 = vpop.permute.xlu1 %347  ;;  %v343_v4 = vpop.permute.xlu0 %342  ;;  %v501_v22 = vld [vmem:[#allocation2 + $0x48] sm:$0xff] }
  0xa1   : > { %v3631_v58 = vadd.f32 %v703_v47, %v635_v30  ;;  %v534_v6 = vmul.f32 %v3571_v45, %v498_v52  ;;  %v602_v7 = vmul.f32 %v3573_v46, %v566_v53  ;;  %v701_v8 = vmul.f32 %v3578_v56, %v665_v54  ;;  %v670_v13 = vld [vmem:[#allocation2 + $0x52] sm:$0xff]  ;;  %469 = vst.msk [vmem:[#allocation2 + $0x81] sm:$0xff] %vm225_vm0, %v348_v3  ;;  %v569_v35 = vld [vmem:[#allocation2 + $0x49] sm:$0xff] }
  0xa2   : > { %v736_v5 = vadd.f32 %v704_v48, %v636_v57  ;;  %468 = vst.msk [vmem:[#allocation2 + $0x79] sm:$0xff] %vm225_vm0, %v343_v4  ;;  %v702_v14 = vmul.f32 %v3578_v56, %v666_v60  ;;  %v800_v15 = vmul.f32 %v3587_v9, %v498_v52  ;;  %v900_v16 = vmul.f32 %v3589_v10, %v566_v53  ;;  %v502_v34 = vld [vmem:[#allocation2 + $0x50] sm:$0xff] }
  0xa3   : > { %v999_v17 = vmul.f32 %v3601_v24, %v665_v54  ;;  %v634_v18 = vadd.f32 %v602_v7, %v534_v6  ;;  %v733_v19 = vadd.f32 %v701_v8, %v633_v32  ;;  %v1000_v20 = vmul.f32 %v3601_v24, %v666_v60  ;;  %v669_v43 = vld [vmem:[#allocation2 + $0x4a] sm:$0xff] }
  0xa4   : > { %v606_v21 = vmul.f32 %v3573_v46, %v570_v2  ;;  %v832_v23 = vadd.f32 %v800_v15, %v732_v25  ;;  %v3656_v30 = vmul.f32 %v3578_v56, %v670_v13  ;;  %v904_v33 = vmul.f32 %v3589_v10, %v570_v2  ;;  %v358_v36 = vpop.permute.xlu1 %357  ;;  %v353_v37 = vpop.permute.xlu0 %352 }
  0xa5   : > { %v1031_v29 = vadd.f32 %v999_v17, %v931_v55  ;;  %v734_v38 = vadd.f32 %v702_v14, %v634_v18  ;;  %v833_v40 = vadd.f32 %v3604_v26, %v733_v19  ;;  %v3661_v32 = vmul.f32 %v3601_v24, %v670_v13  ;;  %471 = vst.msk [vmem:[#allocation2 + $0x99] sm:$0xff] %vm225_vm0, %v358_v36  ;;  %v572_v14 = vld [vmem:[#allocation2 + $0x69] sm:$0xff]  ;;  %v503_v36 = vld [vmem:[#allocation2 + $0x60] sm:$0xff] }
  0xa6   : > { %v1203_v42 = vmul.f32 %v3593_v12, %v570_v2  ;;  %470 = vst.msk [vmem:[#allocation2 + $0x91] sm:$0xff] %vm225_vm0, %v353_v37  ;;  %v932_v25 = vadd.f32 %v900_v16, %v832_v23  ;;  %v3668_v47 = vmul.f32 %v3620_v41, %v670_v13  ;;  %v537_v48 = vmul.f32 %v3571_v45, %v501_v22  ;;  %v504_v37 = vld [vmem:[#allocation2 + $0x68] sm:$0xff] }
  0xa7   : > { %v1132_v44 = vadd.f32 %v3610_v28, %v1031_v29  ;;  %v834_v52 = vadd.f32 %v802_v49, %v734_v38  ;;  %v933_v26 = vadd.f32 %v3607_v27, %v833_v40  ;;  %v538_v53 = vmul.f32 %v3571_v45, %v502_v34 }
  0xa8   : > { %v605_v54 = vmul.f32 %v3573_v46, %v569_v35  ;;  %v1032_v55 = vadd.f32 %v1000_v20, %v932_v25  ;;  %v705_v60 = vmul.f32 %v3578_v56, %v669_v43  ;;  %v803_v2 = vmul.f32 %v3587_v9, %v501_v22  ;;  %v368_v28 = vpop.permute.xlu1 %367  ;;  %v363_v3 = vpop.permute.xlu0 %362  ;;  %v571_v25 = vld [vmem:[#allocation2 + $0x61] sm:$0xff] }
  0xa9   : > { %v1232_v57 = vadd.f32 %v3614_v31, %v1132_v44  ;;  %v934_v4 = vadd.f32 %v902_v50, %v834_v52  ;;  %v1033_v6 = vadd.f32 %v1001_v51, %v933_v26  ;;  %v638_v8 = vadd.f32 %v606_v21, %v538_v53  ;;  %473 = vst.msk [vmem:[#allocation2 + $0xb1] sm:$0xff] %vm225_vm0, %v368_v28  ;;  %v671_v44 = vld [vmem:[#allocation2 + $0x62] sm:$0xff] }
  0xaa   : > { %v637_v7 = vadd.f32 %v605_v54, %v537_v48  ;;  %472 = vst.msk [vmem:[#allocation2 + $0xa9] sm:$0xff] %vm225_vm0, %v363_v3  ;;  %v1133_v27 = vadd.f32 %v1101_v61, %v1032_v55  ;;  %v804_v13 = vmul.f32 %v3587_v9, %v502_v34  ;;  %v835_v31 = vadd.f32 %v803_v2, %v3631_v58 }
  0xab   : > { %v3679_v49 = vadd.f32 %v1300_v63, %v1232_v57  ;;  %v1034_v15 = vadd.f32 %v3634_v59, %v934_v4  ;;  %v903_v50 = vmul.f32 %v3589_v10, %v569_v35  ;;  %v1003_v51 = vmul.f32 %v3601_v24, %v669_v43  ;;  %v672_v63 = vld [vmem:[#allocation2 + $0x6a] sm:$0xff] }
  0xac   : > { %v737_v16 = vadd.f32 %v705_v60, %v637_v7  ;;  %v1233_v17 = vadd.f32 %v3638_v62, %v1133_v27  ;;  %v836_v18 = vadd.f32 %v804_v13, %v736_v5  ;;  %v1102_v19 = vmul.f32 %v3591_v11, %v501_v22  ;;  %v378_v20 = vpop.permute.xlu1 %377  ;;  %v373_v21 = vpop.permute.xlu0 %372 }
  0xad   : > { %v1103_v61 = vmul.f32 %v3591_v11, %v502_v34  ;;  %v935_v23 = vadd.f32 %v903_v50, %v835_v31  ;;  %v1202_v58 = vmul.f32 %v3593_v12, %v569_v35  ;;  %v1302_v59 = vmul.f32 %v3620_v41, %v669_v43  ;;  %475 = vst.msk [vmem:[#allocation2 + $0xc9] sm:$0xff] %vm225_vm0, %v378_v20  ;;  %v574_v31 = vld [vmem:[#allocation2 + $0x81] sm:$0xff] }
  0xae   : > { %v608_v29 = vmul.f32 %v3573_v46, %v572_v14  ;;  %474 = vst.msk [vmem:[#allocation2 + $0xc1] sm:$0xff] %vm225_vm0, %v373_v21  ;;  %v3695_v62 = vadd.f32 %v3642_v0, %v1233_v17  ;;  %v936_v5 = vadd.f32 %v904_v33, %v836_v18  ;;  %v1134_v22 = vadd.f32 %v1102_v19, %v1033_v6  ;;  %v674_v19 = vld [vmem:[#allocation2 + $0x82] sm:$0xff] }
  0xaf   : > { %v1135_v34 = vadd.f32 %v1103_v61, %v1034_v15  ;;  %v1035_v38 = vadd.f32 %v1003_v51, %v935_v23  ;;  %v3698_v40 = vmul.f32 %v3578_v56, %v672_v63  ;;  %v906_v35 = vmul.f32 %v3589_v10, %v572_v14 }
  0xb0   : > { %v3702_v43 = vmul.f32 %v3601_v24, %v672_v63  ;;  %v1234_v48 = vadd.f32 %v1202_v58, %v1134_v22  ;;  %v1205_v0 = vmul.f32 %v3593_v12, %v572_v14  ;;  %v1305_v33 = vmul.f32 %v3620_v41, %v672_v63  ;;  %v388_v26 = vpop.permute.xlu1 %387  ;;  %v383_v53 = vpop.permute.xlu0 %382 }
  0xb1   : > { %v1235_v52 = vadd.f32 %v1203_v42, %v1135_v34  ;;  %v738_v54 = vadd.f32 %v3656_v30, %v638_v8  ;;  %v1036_v55 = vadd.f32 %v3661_v32, %v936_v5  ;;  %v539_v57 = vmul.f32 %v3571_v45, %v503_v36  ;;  %477 = vst.msk [vmem:[#allocation2 + $0xe1] sm:$0xff] %vm225_vm0, %v388_v26  ;;  %v3720_v30 = vld [vmem:[%s4414_s2] ss:$0 sm:$0xff] }
  0xb2   : > { %v540_v60 = vmul.f32 %v3571_v45, %v504_v37  ;;  %476 = vst.msk [vmem:[#allocation2 + $0xd9] sm:$0xff] %vm225_vm0, %v383_v53  ;;  %v1334_v2 = vadd.f32 %v1302_v59, %v1234_v48  ;;  %v607_v28 = vmul.f32 %v3573_v46, %v571_v25  ;;  %v707_v3 = vmul.f32 %v3578_v56, %v671_v44 }
  0xb3   : > { %v3713_v42 = vadd.f32 %v3668_v47, %v1235_v52  ;;  %v805_v4 = vmul.f32 %v3587_v9, %v503_v36  ;;  %v806_v6 = vmul.f32 %v3587_v9, %v504_v37  ;;  %v905_v7 = vmul.f32 %v3589_v10, %v571_v25 }
  0xb4   : > { %v640_v32 = vadd.f32 %v608_v29, %v540_v60  ;;  %v3726_v8 = vadd.f32 %v3720_v30, %v1334_v2  ;;  %v639_v47 = vadd.f32 %v607_v28, %v539_v57  ;;  %v1005_v27 = vmul.f32 %v3601_v24, %v671_v44  ;;  %v398_v14 = vpop.permute.xlu1 %397  ;;  %v393_v15 = vpop.permute.xlu0 %392  ;;  %v505_v29 = vld [vmem:[#allocation2 + $0x78] sm:$0xff] }
  0xb5   : > { %v1104_v13 = vmul.f32 %v3591_v11, %v503_v36  ;;  %v837_v50 = vadd.f32 %v805_v4, %v737_v16  ;;  %v838_v51 = vadd.f32 %v806_v6, %v738_v54  ;;  %v1105_v17 = vmul.f32 %v3591_v11, %v504_v37  ;;  %479 = vst.msk [vmem:[#allocation2 + $0xf9] sm:$0xff] %vm225_vm0, %v398_v14  ;;  %v506_v37 = vld [vmem:[#allocation2 + $0x80] sm:$0xff] }
  0xb6   : > { %v1204_v18 = vmul.f32 %v3593_v12, %v571_v25  ;;  %478 = vst.msk [vmem:[#allocation2 + $0xf1] sm:$0xff] %vm225_vm0, %v393_v15  ;;  %v1404_v61 = vmax.f32 %v3726_v8, 0.0  ;;  %v739_v63 = vadd.f32 %v707_v3, %v639_v47  ;;  %v1304_v21 = vmul.f32 %v3620_v41, %v671_v44  ;;  %v573_v25 = vld [vmem:[#allocation2 + $0x79] sm:$0xff] }
  0xb7   : > { %v1136_v20 = vadd.f32 %v1104_v13, %v1035_v38  ;;  %v937_v23 = vadd.f32 %v905_v7, %v837_v50  ;;  %v938_v58 = vadd.f32 %v906_v35, %v838_v51  ;;  %v1137_v59 = vadd.f32 %v1105_v17, %v1036_v55  ;;  %v673_v38 = vld [vmem:[#allocation2 + $0x7a] sm:$0xff] }
  0xb8   : > { %v610_v16 = vmul.f32 %v3573_v46, %v574_v31  ;;  %v3738_v22 = vmul.f32 %v3578_v56, %v674_v19  ;;  %v908_v34 = vmul.f32 %v3589_v10, %v574_v31  ;;  %v3742_v36 = vmul.f32 %v3601_v24, %v674_v19  ;;  %v408_v48 = vpop.permute.xlu1 %407  ;;  %v403_v44 = vpop.permute.xlu0 %402  ;;  %v576_v51 = vld [vmem:[#allocation2 + $0x99] sm:$0xff] }
  0xb9   : > { %v1236_v5 = vadd.f32 %v1204_v18, %v1136_v20  ;;  %v1037_v52 = vadd.f32 %v1005_v27, %v937_v23  ;;  %v1237_v35 = vadd.f32 %v1205_v0, %v1137_v59  ;;  %v1207_v26 = vmul.f32 %v3593_v12, %v574_v31  ;;  %481 = vst.msk [vmem:[#allocation2 + $0x111] sm:$0xff] %vm225_vm0, %v408_v48  ;;  %v676_v17 = vld [vmem:[#allocation2 + $0x9a] sm:$0xff] }
  0xba   : > { %v3746_v53 = vmul.f32 %v3620_v41, %v674_v19  ;;  %480 = vst.msk [vmem:[#allocation2 + $0x109] sm:$0xff] %vm225_vm0, %v403_v44  ;;  %v740_v55 = vadd.f32 %v3698_v40, %v640_v32  ;;  %v1038_v57 = vadd.f32 %v3702_v43, %v938_v58  ;;  %v541_v60 = vmul.f32 %v3571_v45, %v505_v29 }
  0xbb   : > { %v1336_v54 = vadd.f32 %v1304_v21, %v1236_v5  ;;  %v1337_v2 = vadd.f32 %v1305_v33, %v1237_v35  ;;  %v542_v28 = vmul.f32 %v3571_v45, %v506_v37  ;;  %v609_v0 = vmul.f32 %v3573_v46, %v573_v25 }
  0xbc   : > { %v709_v3 = vmul.f32 %v3578_v56, %v673_v38  ;;  %v807_v6 = vmul.f32 %v3587_v9, %v505_v29  ;;  %v808_v7 = vmul.f32 %v3587_v9, %v506_v37  ;;  %v907_v47 = vmul.f32 %v3589_v10, %v573_v25  ;;  %v418_v40 = vpop.permute.xlu1 %417  ;;  %v413_v32 = vpop.permute.xlu0 %412 }
  0xbd   : > { %v1374_v4 = vadd.f32 %v3720_v30, %v1336_v54  ;;  %v3761_v43 = vadd.f32 %v3720_v30, %v1337_v2  ;;  %v641_v33 = vadd.f32 %v609_v0, %v541_v60  ;;  %v642_v27 = vadd.f32 %v610_v16, %v542_v28  ;;  %483 = vst.msk [vmem:[#allocation2 + $0x129] sm:$0xff] %vm225_vm0, %v418_v40  ;;  %v507_v54 = vld [vmem:[#allocation2 + $0x90] sm:$0xff] }
  0xbe   : > { %v1007_v13 = vmul.f32 %v3601_v24, %v673_v38  ;;  %482 = vst.msk [vmem:[#allocation2 + $0x121] sm:$0xff] %vm225_vm0, %v413_v32  ;;  %v839_v14 = vadd.f32 %v807_v6, %v739_v63  ;;  %v840_v15 = vadd.f32 %v808_v7, %v740_v55  ;;  %v1106_v50 = vmul.f32 %v3591_v11, %v505_v29 }
  0xbf   : > { %v1406_v31 = vmax.f32 %v1374_v4, 0.0  ;;  %v1407_v18 = vmax.f32 %v3761_v43, 0.0  ;;  %v741_v19 = vadd.f32 %v709_v3, %v641_v33  ;;  %v1107_v20 = vmul.f32 %v3591_v11, %v506_v37  ;;  %v508_v37 = vld [vmem:[#allocation2 + $0x98] sm:$0xff] }
  0xc0   : > { %v1206_v21 = vmul.f32 %v3593_v12, %v573_v25  ;;  %v939_v58 = vadd.f32 %v907_v47, %v839_v14  ;;  %v940_v59 = vadd.f32 %v908_v34, %v840_v15  ;;  %v1138_v16 = vadd.f32 %v1106_v50, %v1037_v52  ;;  %v428_v5 = vpop.permute.xlu1 %427  ;;  %v423_v63 = vpop.permute.xlu0 %422  ;;  %v686_v1 = vld [vmem:[#allocation2 + $0x112] sm:$0xff] }
  0xc1   : > { %v3771_v23 = vsel %vm225_vm0, %v1406_v31, -inf  ;;  %v1139_v48 = vadd.f32 %v1107_v20, %v1038_v57  ;;  %v1306_v29 = vmul.f32 %v3620_v41, %v673_v38  ;;  %v612_v44 = vmul.f32 %v3573_v46, %v576_v51  ;;  %485 = vst.msk [vmem:[#allocation2 + $0x141] sm:$0xff] %vm225_vm0, %v428_v5  ;;  %484 = vst.msk [vmem:[#allocation2 + $0x139] sm:$0xff] %vm225_vm0, %v423_v63  ;;  %v575_v57 = vld [vmem:[#allocation2 + $0x91] sm:$0xff] }
  0xc2   : > { %v3776_v35 = vmul.f32 %v3578_v56, %v676_v17  ;;  %v1039_v25 = vadd.f32 %v1007_v13, %v939_v58  ;;  %v1238_v55 = vadd.f32 %v1206_v21, %v1138_v16  ;;  %v910_v34 = vmul.f32 %v3589_v10, %v576_v51  ;;  %v675_v38 = vld [vmem:[#allocation2 + $0x92] sm:$0xff] }
  0xc3   : > { %v3782_v52 = vmul.f32 %v3601_v24, %v676_v17  ;;  %v1239_v60 = vadd.f32 %v1207_v26, %v1139_v48  ;;  %v1209_v2 = vmul.f32 %v3593_v12, %v576_v51  ;;  %v1309_v28 = vmul.f32 %v3620_v41, %v676_v17  ;;  %v578_v58 = vld [vmem:[#allocation2 + $0xb1] sm:$0xff] }
  0xc4   : > { %v742_v0 = vadd.f32 %v3738_v22, %v642_v27  ;;  %v1338_v3 = vadd.f32 %v1306_v29, %v1238_v55  ;;  %v1040_v4 = vadd.f32 %v3742_v36, %v940_v59  ;;  %v543_v6 = vmul.f32 %v3571_v45, %v507_v54  ;;  %v438_v47 = vpop.permute.xlu1 %437  ;;  %v433_v40 = vpop.permute.xlu0 %432 }
  0xc5   : > { %v544_v7 = vmul.f32 %v3571_v45, %v508_v37  ;;  %v1339_v32 = vadd.f32 %v3746_v53, %v1239_v60  ;;  %v611_v33 = vmul.f32 %v3573_v46, %v575_v57  ;;  %v711_v26 = vmul.f32 %v3578_v56, %v675_v38  ;;  %487 = vst.msk [vmem:[#allocation2 + $0x159] sm:$0xff] %vm225_vm0, %v438_v47 }
  0xc6   : > { %v809_v13 = vmul.f32 %v3587_v9, %v507_v54  ;;  %486 = vst.msk [vmem:[#allocation2 + $0x151] sm:$0xff] %vm225_vm0, %v433_v40  ;;  %v1376_v22 = vadd.f32 %v3720_v30, %v1338_v3  ;;  %v810_v27 = vmul.f32 %v3587_v9, %v508_v37  ;;  %v909_v31 = vmul.f32 %v3589_v10, %v575_v57 }
  0xc7   : > { %v644_v36 = vadd.f32 %v612_v44, %v544_v7  ;;  %v3800_v14 = vadd.f32 %v3720_v30, %v1339_v32  ;;  %v643_v53 = vadd.f32 %v611_v33, %v543_v6  ;;  %v1009_v50 = vmul.f32 %v3601_v24, %v675_v38  ;;  %v678_v44 = vld [vmem:[#allocation2 + $0xb2] sm:$0xff]  ;;  %v509_v7 = vld [vmem:[#allocation2 + $0xa8] sm:$0xff] }
  0xc8   : > { %v841_v15 = vadd.f32 %v809_v13, %v741_v19  ;;  %v1408_v51 = vmax.f32 %v1376_v22, 0.0  ;;  %v842_v17 = vadd.f32 %v810_v27, %v742_v0  ;;  %v1108_v20 = vmul.f32 %v3591_v11, %v507_v54  ;;  %v448_v59 = vpop.permute.xlu1 %447  ;;  %v443_v16 = vpop.permute.xlu0 %442  ;;  %v510_v33 = vld [vmem:[#allocation2 + $0xb0] sm:$0xff] }
  0xc9   : > { %v1109_v21 = vmul.f32 %v3591_v11, %v508_v37  ;;  %v1409_v5 = vmax.f32 %v3800_v14, 0.0  ;;  %v743_v63 = vadd.f32 %v711_v26, %v643_v53  ;;  %v1208_v29 = vmul.f32 %v3593_v12, %v575_v57  ;;  %489 = vst.msk [vmem:[#allocation2 + $0x171] sm:$0xff] %vm225_vm0, %v448_v59  ;;  %488 = vst.msk [vmem:[#allocation2 + $0x169] sm:$0xff] %vm225_vm0, %v443_v16  ;;  %v577_v26 = vld [vmem:[#allocation2 + $0xa9] sm:$0xff] }
  0xca   : > { %v941_v48 = vadd.f32 %v909_v31, %v841_v15  ;;  %v1441_v19 = vsel %vm225_vm0, %v1408_v51, -inf  ;;  %v942_v55 = vadd.f32 %v910_v34, %v842_v17  ;;  %v1140_v54 = vadd.f32 %v1108_v20, %v1039_v25  ;;  %v677_v13 = vld [vmem:[#allocation2 + $0xaa] sm:$0xff] }
  0xcb   : > { %v1141_v60 = vadd.f32 %v1109_v21, %v1040_v4  ;;  %v1442_v37 = vmax.f32 %v3771_v23, %v1441_v19  ;;  %v1308_v3 = vmul.f32 %v3620_v41, %v675_v38  ;;  %v614_v6 = vmul.f32 %v3573_v46, %v578_v58  ;;  %v580_v19 = vld [vmem:[#allocation2 + $0xc9] sm:$0xff] }
  0xcc   : > { %v1041_v0 = vadd.f32 %v1009_v50, %v941_v48  ;;  %v1240_v47 = vadd.f32 %v1208_v29, %v1140_v54  ;;  %v714_v40 = vmul.f32 %v3578_v56, %v678_v44  ;;  %v912_v32 = vmul.f32 %v3589_v10, %v578_v58  ;;  %v458_v34 = vpop.permute.xlu1 %457  ;;  %v453_v25 = vpop.permute.xlu0 %452 }
  0xcd   : > { %v1241_v57 = vadd.f32 %v1209_v2, %v1141_v60  ;;  %1509 = vst.msk [vmem:[#allocation3 + $0x32] sm:$0xff] %vm225_vm0, %v1442_v37  ;;  %v1012_v23 = vmul.f32 %v3601_v24, %v678_v44  ;;  %v1211_v38 = vmul.f32 %v3593_v12, %v578_v58  ;;  %v1311_v4 = vmul.f32 %v3620_v41, %v678_v44 }
  0xce   : > { %v744_v22 = vadd.f32 %v3776_v35, %v644_v36  ;;  %491 = vst.msk [vmem:[#allocation2 + $0x189] sm:$0xff] %vm225_vm0, %v458_v34  ;;  %490 = vst.msk [vmem:[#allocation2 + $0x181] sm:$0xff] %vm225_vm0, %v453_v25  ;;  %v1340_v2 = vadd.f32 %v1308_v3, %v1240_v47  ;;  %v1042_v31 = vadd.f32 %v3782_v52, %v942_v55  ;;  %v680_v55 = vld [vmem:[#allocation2 + $0xca] sm:$0xff] }
  0xcf   : > { %v1341_v27 = vadd.f32 %v1309_v28, %v1241_v57  ;;  %v545_v53 = vmul.f32 %v3571_v45, %v509_v7  ;;  %v546_v15 = vmul.f32 %v3571_v45, %v510_v33  ;;  %v613_v50 = vmul.f32 %v3573_v46, %v577_v26 }
  0xd0   : > { %v713_v51 = vmul.f32 %v3578_v56, %v677_v13  ;;  %v811_v17 = vmul.f32 %v3587_v9, %v509_v7  ;;  %v1378_v35 = vadd.f32 %v3720_v30, %v1340_v2  ;;  %v812_v20 = vmul.f32 %v3587_v9, %v510_v33  ;;  %v511_v2 = vld [vmem:[#allocation2 + $0xc0] sm:$0xff] }
  0xd1   : > { %v3830_v36 = vadd.f32 %v3720_v30, %v1341_v27  ;;  %v911_v28 = vmul.f32 %v3589_v10, %v577_v26  ;;  %v645_v52 = vadd.f32 %v613_v50, %v545_v53  ;;  %v646_v21 = vadd.f32 %v614_v6, %v546_v15  ;;  %v512_v27 = vld [vmem:[#allocation2 + $0xc8] sm:$0xff] }
  0xd2   : > { %v843_v58 = vadd.f32 %v811_v17, %v743_v63  ;;  %v1011_v59 = vmul.f32 %v3601_v24, %v677_v13  ;;  %v1410_v16 = vmax.f32 %v1378_v35, 0.0  ;;  %v844_v29 = vadd.f32 %v812_v20, %v744_v22  ;;  %v579_v53 = vld [vmem:[#allocation2 + $0xc1] sm:$0xff] }
  0xd3   : > { %v1411_v48 = vmax.f32 %v3830_v36, 0.0  ;;  %v1110_v44 = vmul.f32 %v3591_v11, %v509_v7  ;;  %v745_v54 = vadd.f32 %v713_v51, %v645_v52  ;;  %v1111_v37 = vmul.f32 %v3591_v11, %v510_v33 }
  0xd4   : > { %v943_v60 = vadd.f32 %v911_v28, %v843_v58  ;;  %v1210_v3 = vmul.f32 %v3593_v12, %v577_v26  ;;  %v3840_v47 = vsel %vm225_vm0, %v1410_v16, -inf  ;;  %v944_v63 = vadd.f32 %v912_v32, %v844_v29  ;;  %v679_v32 = vld [vmem:[#allocation2 + $0xc2] sm:$0xff] }
  0xd5   : > { %v1142_v6 = vadd.f32 %v1110_v44, %v1041_v0  ;;  %v1310_v57 = vmul.f32 %v3620_v41, %v677_v13  ;;  %v1143_v25 = vadd.f32 %v1111_v37, %v1042_v31  ;;  %v616_v22 = vmul.f32 %v3573_v46, %v580_v19 }
  0xd6   : > { %v1043_v34 = vadd.f32 %v1011_v59, %v943_v60  ;;  %v716_v7 = vmul.f32 %v3578_v56, %v680_v55  ;;  %v914_v33 = vmul.f32 %v3589_v10, %v580_v19  ;;  %v1014_v26 = vmul.f32 %v3601_v24, %v680_v55 }
  0xd7   : > { %v1242_v15 = vadd.f32 %v1210_v3, %v1142_v6  ;;  %v1213_v50 = vmul.f32 %v3593_v12, %v580_v19  ;;  %v1243_v0 = vadd.f32 %v1211_v38, %v1143_v25  ;;  %v1313_v13 = vmul.f32 %v3620_v41, %v680_v55  ;;  %v682_v6 = vld [vmem:[#allocation2 + $0xe2] sm:$0xff] }
  0xd8   : > { %v746_v51 = vadd.f32 %v714_v40, %v646_v21  ;;  %v1044_v31 = vadd.f32 %v1012_v23, %v944_v63  ;;  %v547_v35 = vmul.f32 %v3571_v45, %v511_v2  ;;  %v548_v20 = vmul.f32 %v3571_v45, %v512_v27  ;;  %v582_v63 = vld [vmem:[#allocation2 + $0xe1] sm:$0xff] }
  0xd9   : > { %v1342_v17 = vadd.f32 %v1310_v57, %v1242_v15  ;;  %v615_v28 = vmul.f32 %v3573_v46, %v579_v53  ;;  %v1343_v52 = vadd.f32 %v1311_v4, %v1243_v0  ;;  %v715_v58 = vmul.f32 %v3578_v56, %v679_v32 }
  0xda   : > { %v813_v59 = vmul.f32 %v3587_v9, %v511_v2  ;;  %v814_v16 = vmul.f32 %v3587_v9, %v512_v27  ;;  %v648_v44 = vadd.f32 %v616_v22, %v548_v20  ;;  %v913_v40 = vmul.f32 %v3589_v10, %v579_v53 }
  0xdb   : > { %v1380_v38 = vadd.f32 %v3720_v30, %v1342_v17  ;;  %v647_v29 = vadd.f32 %v615_v28, %v547_v35  ;;  %v3858_v23 = vadd.f32 %v3720_v30, %v1343_v52  ;;  %v1013_v55 = vmul.f32 %v3601_v24, %v679_v32  ;;  %v513_v28 = vld [vmem:[#allocation2 + $0xd8] sm:$0xff]  ;;  %v514_v52 = vld [vmem:[#allocation2 + $0xe0] sm:$0xff] }
  0xdc   : > { %v845_v21 = vadd.f32 %v813_v59, %v745_v54  ;;  %v846_v19 = vadd.f32 %v814_v16, %v746_v51  ;;  %v1112_v37 = vmul.f32 %v3591_v11, %v511_v2  ;;  %v1113_v3 = vmul.f32 %v3591_v11, %v512_v27  ;;  %v581_v16 = vld [vmem:[#allocation2 + $0xd9] sm:$0xff] }
  0xdd   : > { %v1412_v4 = vmax.f32 %v1380_v38, 0.0  ;;  %v747_v60 = vadd.f32 %v715_v58, %v647_v29  ;;  %v1413_v57 = vmax.f32 %v3858_v23, 0.0  ;;  %v1212_v15 = vmul.f32 %v3593_v12, %v579_v53 }
  0xde   : > { %v945_v25 = vadd.f32 %v913_v40, %v845_v21  ;;  %v946_v22 = vadd.f32 %v914_v33, %v846_v19  ;;  %v1144_v54 = vadd.f32 %v1112_v37, %v1043_v34  ;;  %v1145_v51 = vadd.f32 %v1113_v3, %v1044_v31  ;;  %v681_v34 = vld [vmem:[#allocation2 + $0xda] sm:$0xff] }
  0xdf   : > { %v1447_v0 = vsel %vm225_vm0, %v1412_v4, -inf  ;;  %v1312_v17 = vmul.f32 %v3620_v41, %v679_v32  ;;  %v618_v2 = vmul.f32 %v3573_v46, %v582_v63  ;;  %v718_v27 = vmul.f32 %v3578_v56, %v682_v6 }
  0xe0   : > { %v1448_v35 = vmax.f32 %v3840_v47, %v1447_v0  ;;  %v1045_v20 = vadd.f32 %v1013_v55, %v945_v25  ;;  %v1244_v58 = vadd.f32 %v1212_v15, %v1144_v54  ;;  %v1245_v59 = vadd.f32 %v1213_v50, %v1145_v51  ;;  %v584_v51 = vld [vmem:[#allocation2 + $0xf9] sm:$0xff] }
  0xe1   : > { %v916_v33 = vmul.f32 %v3589_v10, %v582_v63  ;;  %v1016_v53 = vmul.f32 %v3601_v24, %v682_v6  ;;  %v1215_v32 = vmul.f32 %v3593_v12, %v582_v63  ;;  %v1315_v47 = vmul.f32 %v3620_v41, %v682_v6 }
  0xe2   : > { %1511 = vst.msk [vmem:[#allocation3 + $0x4a] sm:$0xff] %vm225_vm0, %v1448_v35  ;;  %v748_v31 = vadd.f32 %v716_v7, %v648_v44  ;;  %v1046_v38 = vadd.f32 %v1014_v26, %v946_v22  ;;  %v1344_v29 = vadd.f32 %v1312_v17, %v1244_v58  ;;  %v1345_v40 = vadd.f32 %v1313_v13, %v1245_v59  ;;  %v684_v17 = vld [vmem:[#allocation2 + $0xfa] sm:$0xff] }
  0xe3   : > { %v549_v21 = vmul.f32 %v3571_v45, %v513_v28  ;;  %v550_v50 = vmul.f32 %v3571_v45, %v514_v52  ;;  %v617_v19 = vmul.f32 %v3573_v46, %v581_v16  ;;  %v717_v55 = vmul.f32 %v3578_v56, %v681_v34 }
  0xe4   : > { %v815_v4 = vmul.f32 %v3587_v9, %v513_v28  ;;  %v816_v37 = vmul.f32 %v3587_v9, %v514_v52  ;;  %v1382_v3 = vadd.f32 %v3720_v30, %v1344_v29  ;;  %v3883_v63 = vadd.f32 %v3720_v30, %v1345_v40 }
  0xe5   : > { %v650_v7 = vadd.f32 %v618_v2, %v550_v50  ;;  %v915_v26 = vmul.f32 %v3589_v10, %v581_v16  ;;  %v649_v13 = vadd.f32 %v617_v19, %v549_v21  ;;  %v1015_v25 = vmul.f32 %v3601_v24, %v681_v34  ;;  %v515_v21 = vld [vmem:[#allocation2 + $0xf0] sm:$0xff] }
  0xe6   : > { %v847_v44 = vadd.f32 %v815_v4, %v747_v60  ;;  %v848_v6 = vadd.f32 %v816_v37, %v748_v31  ;;  %v1414_v22 = vmax.f32 %v1382_v3, 0.0  ;;  %v1114_v0 = vmul.f32 %v3591_v11, %v513_v28  ;;  %v583_v4 = vld [vmem:[#allocation2 + $0xf1] sm:$0xff] }
  0xe7   : > { %v1115_v54 = vmul.f32 %v3591_v11, %v514_v52  ;;  %v749_v35 = vadd.f32 %v717_v55, %v649_v13  ;;  %v1214_v2 = vmul.f32 %v3593_v12, %v581_v16  ;;  %v1314_v40 = vmul.f32 %v3620_v41, %v681_v34  ;;  %v516_v55 = vld [vmem:[#allocation2 + $0xf8] sm:$0xff] }
  0xe8   : > { %v947_v58 = vadd.f32 %v915_v26, %v847_v44  ;;  %v948_v59 = vadd.f32 %v916_v33, %v848_v6  ;;  %v3892_v29 = vsel %vm225_vm0, %v1414_v22, -inf  ;;  %v1146_v60 = vadd.f32 %v1114_v0, %v1045_v20  ;;  %v683_v20 = vld [vmem:[#allocation2 + $0xf2] sm:$0xff] }
  0xe9   : > { %v1147_v31 = vadd.f32 %v1115_v54, %v1046_v38  ;;  %v620_v28 = vmul.f32 %v3573_v46, %v584_v51  ;;  %v720_v52 = vmul.f32 %v3578_v56, %v684_v17  ;;  %v918_v19 = vmul.f32 %v3589_v10, %v584_v51 }
  0xea   : > { %v1047_v50 = vadd.f32 %v1015_v25, %v947_v58  ;;  %v1246_v33 = vadd.f32 %v1214_v2, %v1146_v60  ;;  %v1018_v16 = vmul.f32 %v3601_v24, %v684_v17  ;;  %v1217_v3 = vmul.f32 %v3593_v12, %v584_v51  ;;  %v586_v60 = vld [vmem:[#allocation2 + $0x111] sm:$0xff] }
  0xeb   : > { %v1247_v37 = vadd.f32 %v1215_v32, %v1147_v31  ;;  %v1317_v38 = vmul.f32 %v3620_v41, %v684_v17  ;;  %v750_v34 = vadd.f32 %v718_v27, %v650_v7  ;;  %v1048_v26 = vadd.f32 %v1016_v53, %v948_v59 }
  0xec   : > { %v551_v13 = vmul.f32 %v3571_v45, %v515_v21  ;;  %v1346_v44 = vadd.f32 %v1314_v40, %v1246_v33  ;;  %v552_v25 = vmul.f32 %v3571_v45, %v516_v55  ;;  %v619_v22 = vmul.f32 %v3573_v46, %v583_v4 }
  0xed   : > { %v1347_v6 = vadd.f32 %v1315_v47, %v1247_v37  ;;  %v719_v0 = vmul.f32 %v3578_v56, %v683_v20  ;;  %v817_v32 = vmul.f32 %v3587_v9, %v515_v21  ;;  %v818_v54 = vmul.f32 %v3587_v9, %v516_v55 }
  0xee   : > { %v917_v51 = vmul.f32 %v3589_v10, %v583_v4  ;;  %v1384_v17 = vadd.f32 %v3720_v30, %v1346_v44  ;;  %v651_v53 = vadd.f32 %v619_v22, %v551_v13  ;;  %v652_v7 = vadd.f32 %v620_v28, %v552_v25 }
  0xef   : > { %v3910_v27 = vadd.f32 %v3720_v30, %v1347_v6  ;;  %v849_v47 = vadd.f32 %v817_v32, %v749_v35  ;;  %v850_v58 = vadd.f32 %v818_v54, %v750_v34  ;;  %v1017_v59 = vmul.f32 %v3601_v24, %v683_v20  ;;  %v518_v54 = vld [vmem:[#allocation2 + $0x110] sm:$0xff] }
  0xf0   : > { %v1116_v2 = vmul.f32 %v3591_v11, %v515_v21  ;;  %v1416_v31 = vmax.f32 %v1384_v17, 0.0  ;;  %v751_v33 = vadd.f32 %v719_v0, %v651_v53  ;;  %v1117_v37 = vmul.f32 %v3591_v11, %v516_v55  ;;  %v517_v55 = vld [vmem:[#allocation2 + $0x108] sm:$0xff] }
  0xf1   : > { %v949_v44 = vadd.f32 %v917_v51, %v849_v47  ;;  %v950_v15 = vadd.f32 %v918_v19, %v850_v58  ;;  %v1216_v13 = vmul.f32 %v3593_v12, %v583_v4  ;;  %v1316_v34 = vmul.f32 %v3620_v41, %v683_v20  ;;  %v585_v51 = vld [vmem:[#allocation2 + $0x109] sm:$0xff] }
  0xf2   : > { %v1148_v6 = vadd.f32 %v1116_v2, %v1047_v50  ;;  %v1453_v35 = vsel %vm225_vm0, %v1416_v31, -inf  ;;  %v1149_v28 = vadd.f32 %v1117_v37, %v1048_v26  ;;  %v622_v21 = vmul.f32 %v3573_v46, %v586_v60  ;;  %v685_v17 = vld [vmem:[#allocation2 + $0x10a] sm:$0xff] }
  0xf3   : > { %v1454_v25 = vmax.f32 %v3892_v29, %v1453_v35  ;;  %v1049_v22 = vadd.f32 %v1017_v59, %v949_v44  ;;  %v722_v0 = vmul.f32 %v3578_v56, %v686_v1  ;;  %v920_v50 = vmul.f32 %v3589_v10, %v586_v60  ;;  %v588_v35 = vld [vmem:[#allocation2 + $0x129] sm:$0xff] }
  0xf4   : > { %v1248_v32 = vadd.f32 %v1216_v13, %v1148_v6  ;;  %v1249_v19 = vadd.f32 %v1217_v3, %v1149_v28  ;;  %v1020_v4 = vmul.f32 %v3601_v24, %v686_v1  ;;  %v1219_v26 = vmul.f32 %v3593_v12, %v586_v60 }
  0xf5   : > { %1513 = vst.msk [vmem:[#allocation3 + $0x62] sm:$0xff] %vm225_vm0, %v1454_v25  ;;  %v1319_v29 = vmul.f32 %v3620_v41, %v686_v1  ;;  %v752_v53 = vadd.f32 %v720_v52, %v652_v7  ;;  %v1050_v47 = vadd.f32 %v1018_v16, %v950_v15  ;;  %v553_v59 = vmul.f32 %v3571_v45, %v517_v55 }
  0xf6   : > { %v1348_v20 = vadd.f32 %v1316_v34, %v1248_v32  ;;  %v1349_v58 = vadd.f32 %v1317_v38, %v1249_v19  ;;  %v554_v2 = vmul.f32 %v3571_v45, %v518_v54  ;;  %v621_v3 = vmul.f32 %v3573_v46, %v585_v51  ;;  %v688_v19 = vld [vmem:[#allocation2 + $0x12a] sm:$0xff] }
  0xf7   : > { %v721_v37 = vmul.f32 %v3578_v56, %v685_v17  ;;  %v819_v60 = vmul.f32 %v3587_v9, %v517_v55  ;;  %v820_v44 = vmul.f32 %v3587_v9, %v518_v54  ;;  %v919_v52 = vmul.f32 %v3589_v10, %v585_v51 }
  0xf8   : > { %v1386_v31 = vadd.f32 %v3720_v30, %v1348_v20  ;;  %v3935_v6 = vadd.f32 %v3720_v30, %v1349_v58  ;;  %v653_v1 = vadd.f32 %v621_v3, %v553_v59  ;;  %v654_v15 = vadd.f32 %v622_v21, %v554_v2 }
  0xf9   : > { %v851_v38 = vadd.f32 %v819_v60, %v751_v33  ;;  %v852_v7 = vadd.f32 %v820_v44, %v752_v53  ;;  %v1019_v13 = vmul.f32 %v3601_v24, %v685_v17  ;;  %v1118_v25 = vmul.f32 %v3591_v11, %v517_v55 }
  0xfa   : > { %v1418_v16 = vmax.f32 %v1386_v31, 0.0  ;;  %v753_v34 = vadd.f32 %v721_v37, %v653_v1  ;;  %v1119_v32 = vmul.f32 %v3591_v11, %v518_v54  ;;  %v1218_v59 = vmul.f32 %v3593_v12, %v585_v51  ;;  %v519_v31 = vld [vmem:[#allocation2 + $0x120] sm:$0xff]  ;;  %v520_v37 = vld [vmem:[#allocation2 + $0x128] sm:$0xff] }
  0xfb   : > { %v951_v21 = vadd.f32 %v919_v52, %v851_v38  ;;  %v952_v58 = vadd.f32 %v920_v50, %v852_v7  ;;  %v1150_v33 = vadd.f32 %v1118_v25, %v1049_v22  ;;  %v1318_v2 = vmul.f32 %v3620_v41, %v685_v17  ;;  %v587_v1 = vld [vmem:[#allocation2 + $0x121] sm:$0xff] }
  0xfc   : > { %v3943_v20 = vsel %vm225_vm0, %v1418_v16, -inf  ;;  %v1151_v53 = vadd.f32 %v1119_v32, %v1050_v47  ;;  %v624_v3 = vmul.f32 %v3573_v46, %v588_v35  ;;  %v724_v55 = vmul.f32 %v3578_v56, %v688_v19  ;;  %v687_v52 = vld [vmem:[#allocation2 + $0x122] sm:$0xff] }
  0xfd   : > { %v1051_v60 = vadd.f32 %v1019_v13, %v951_v21  ;;  %v922_v54 = vmul.f32 %v3589_v10, %v588_v35  ;;  %v1022_v44 = vmul.f32 %v3601_v24, %v688_v19  ;;  %v1250_v50 = vadd.f32 %v1218_v59, %v1150_v33 }
  0xfe   : > { %v1251_v16 = vadd.f32 %v1219_v26, %v1151_v53  ;;  %v1221_v22 = vmul.f32 %v3593_v12, %v588_v35  ;;  %v1321_v51 = vmul.f32 %v3620_v41, %v688_v19  ;;  %v754_v17 = vadd.f32 %v722_v0, %v654_v15  ;;  %v590_v53 = vld [vmem:[#allocation2 + $0x141] sm:$0xff] }
  0xff   : > { %v1052_v47 = vadd.f32 %v1020_v4, %v952_v58  ;;  %v555_v38 = vmul.f32 %v3571_v45, %v519_v31  ;;  %v556_v7 = vmul.f32 %v3571_v45, %v520_v37  ;;  %v1350_v13 = vadd.f32 %v1318_v2, %v1250_v50  ;;  %v690_v2 = vld [vmem:[#allocation2 + $0x142] sm:$0xff] }
 0x100   : > { %v1351_v25 = vadd.f32 %v1319_v29, %v1251_v16  ;;  %v623_v32 = vmul.f32 %v3573_v46, %v587_v1  ;;  %v723_v21 = vmul.f32 %v3578_v56, %v687_v52  ;;  %v821_v59 = vmul.f32 %v3587_v9, %v519_v31 }
 0x101   : > { %v656_v28 = vadd.f32 %v624_v3, %v556_v7  ;;  %v822_v26 = vmul.f32 %v3587_v9, %v520_v37  ;;  %v921_v35 = vmul.f32 %v3589_v10, %v587_v1  ;;  %v1388_v41 = vadd.f32 %v3720_v30, %v1350_v13 }
 0x102   : > { %v3962_v0 = vadd.f32 %v3720_v30, %v1351_v25  ;;  %v655_v4 = vadd.f32 %v623_v32, %v555_v38  ;;  %v1021_v15 = vmul.f32 %v3601_v24, %v687_v52  ;;  %v853_v29 = vadd.f32 %v821_v59, %v753_v34  ;;  %v3973_v34 = vld [vmem:[%s4413_s1 + $0x8] ss:$0 sm:$0xff] }
 0x103   : > { %v854_v19 = vadd.f32 %v822_v26, %v754_v17  ;;  %v1120_v58 = vmul.f32 %v3591_v11, %v519_v31  ;;  %v1121_v33 = vmul.f32 %v3591_v11, %v520_v37  ;;  %v1420_v3 = vmax.f32 %v1388_v41, 0.0 }
 0x104   : > { %v1421_v50 = vmax.f32 %v3962_v0, 0.0  ;;  %v755_v16 = vadd.f32 %v723_v21, %v655_v4  ;;  %v1220_v7 = vmul.f32 %v3593_v12, %v587_v1  ;;  %v953_v13 = vadd.f32 %v921_v35, %v853_v29  ;;  %v522_v4 = vld [vmem:[#allocation2 + $0x140] sm:$0xff] }
 0x105   : > { %v954_v25 = vadd.f32 %v922_v54, %v854_v19  ;;  %v1152_v40 = vadd.f32 %v1120_v58, %v1051_v60  ;;  %v1153_v38 = vadd.f32 %v1121_v33, %v1052_v47  ;;  %v1459_v32 = vsel %vm225_vm0, %v1420_v3, -inf }
 0x106   : > { %v1320_v31 = vmul.f32 %v3973_v34, %v687_v52  ;;  %v626_v37 = vmul.f32 %v3573_v46, %v590_v53  ;;  %v3978_v17 = vmul.f32 %v3578_v56, %v690_v2  ;;  %v1460_v1 = vmax.f32 %v3943_v20, %v1459_v32 }
 0x107   : > { %v1053_v21 = vadd.f32 %v1021_v15, %v953_v13  ;;  %v1252_v54 = vadd.f32 %v1220_v7, %v1152_v40  ;;  %v1253_v60 = vadd.f32 %v1221_v22, %v1153_v38  ;;  %v924_v47 = vmul.f32 %v3589_v10, %v590_v53  ;;  %v521_v22 = vld [vmem:[#allocation2 + $0x138] sm:$0xff] }
 0x108   : > { %v3983_v59 = vmul.f32 %v3601_v24, %v690_v2  ;;  %v1223_v26 = vmul.f32 %v3593_v12, %v590_v53  ;;  %v3987_v35 = vmul.f32 %v3973_v34, %v690_v2  ;;  %1515 = vst.msk [vmem:[#allocation3 + $0x7a] sm:$0xff] %vm225_vm0, %v1460_v1  ;;  %v1370_v20 = vadd.f32 %v3720_v30, %v3679_v49  ;;  %v589_v15 = vld [vmem:[#allocation2 + $0x139] sm:$0xff] }
 0x109   : > { %v1352_v52 = vadd.f32 %v1320_v31, %v1252_v54  ;;  %v1353_v41 = vadd.f32 %v1321_v51, %v1253_v60  ;;  %v1371_v40 = vadd.f32 %v3720_v30, %v3695_v62  ;;  %v1373_v29 = vadd.f32 %v3720_v30, %v3713_v42  ;;  %v689_v13 = vld [vmem:[#allocation2 + $0x13a] sm:$0xff] }
 0x10a   : > { %v1435_v19 = vsel %vm225_vm0, %v1404_v61, -inf  ;;  %v756_v58 = vadd.f32 %v724_v55, %v656_v28  ;;  %v1054_v33 = vadd.f32 %v1022_v44, %v954_v25  ;;  %v1402_v49 = vmax.f32 %v1370_v20, 0.0 }
 0x10b   : > { %v1390_v51 = vadd.f32 %v3720_v30, %v1352_v52  ;;  %v4001_v53 = vadd.f32 %v3720_v30, %v1353_v41  ;;  %v1403_v2 = vmax.f32 %v1371_v40, 0.0  ;;  %v1405_v62 = vmax.f32 %v1373_v29, 0.0  ;;  %v592_v52 = vld [vmem:[#allocation2 + $0x159] sm:$0xff] }
 0x10c   : > { %v557_v3 = vmul.f32 %v3571_v45, %v521_v22  ;;  %v558_v7 = vmul.f32 %v3571_v45, %v522_v4  ;;  %v625_v42 = vmul.f32 %v3573_v46, %v589_v15  ;;  %v1434_v28 = vsel %vm225_vm0, %v1402_v49, -inf }
 0x10d   : > { %v1422_v8 = vmax.f32 %v1390_v51, 0.0  ;;  %v1423_v61 = vmax.f32 %v4001_v53, 0.0  ;;  %v1437_v55 = vsel %vm225_vm0, %v1403_v2, -inf  ;;  %v1436_v44 = vmax.f32 %v1434_v28, %v1435_v19  ;;  %v1536_v53 = vld [vmem:[%s4415_s3 + $0x68] sm:$0xff] }
 0x10e   : > { %v1438_v25 = vsel %vm225_vm0, %v1405_v62, -inf  ;;  %v657_v38 = vadd.f32 %v625_v42, %v557_v3  ;;  %v658_v32 = vadd.f32 %v626_v37, %v558_v7  ;;  %v725_v54 = vmul.f32 %v3578_v56, %v689_v13  ;;  %v692_v37 = vld [vmem:[#allocation2 + $0x15a] sm:$0xff] }
 0x10f   : > { %v4011_v31 = vsel %vm225_vm0, %v1422_v8, -inf  ;;  %v1439_v1 = vmax.f32 %v1437_v55, %v1438_v25  ;;  %v823_v60 = vmul.f32 %v3587_v9, %v521_v22  ;;  %1507 = vst.msk [vmem:[#allocation3 + $0x1a] sm:$0xff] %vm225_vm0, %v1436_v44  ;;  %v824_v41 = vmul.f32 %v3587_v9, %v522_v4 }
 0x110   : > { %v923_v20 = vmul.f32 %v3589_v10, %v589_v15  ;;  %v1023_v40 = vmul.f32 %v3601_v24, %v689_v13  ;;  %v1122_v29 = vmul.f32 %v3591_v11, %v521_v22  ;;  %v757_v19 = vadd.f32 %v725_v54, %v657_v38 }
 0x111   : > { %1508 = vst.msk [vmem:[#allocation3 + $0x22] sm:$0xff] %vm225_vm0, %v1439_v1  ;;  %v855_v51 = vadd.f32 %v823_v60, %v755_v16  ;;  %v1123_v49 = vmul.f32 %v3591_v11, %v522_v4  ;;  %v1222_v2 = vmul.f32 %v3593_v12, %v589_v15  ;;  %v856_v62 = vadd.f32 %v824_v41, %v756_v58  ;;  %v524_v15 = vld [vmem:[#allocation2 + $0x158] sm:$0xff] }
 0x112   : > { %v1154_v3 = vadd.f32 %v1122_v29, %v1053_v21  ;;  %v1322_v7 = vmul.f32 %v3973_v34, %v689_v13  ;;  %v628_v42 = vmul.f32 %v3573_v46, %v592_v52  ;;  %v4026_v55 = vmul.f32 %v3578_v56, %v692_v37  ;;  %v523_v21 = vld [vmem:[#allocation2 + $0x150] sm:$0xff] }
 0x113   : > { %v955_v8 = vadd.f32 %v923_v20, %v855_v51  ;;  %v1155_v28 = vadd.f32 %v1123_v49, %v1054_v33  ;;  %v926_v22 = vmul.f32 %v3589_v10, %v592_v52  ;;  %v956_v44 = vadd.f32 %v924_v47, %v856_v62  ;;  %v591_v1 = vld [vmem:[#allocation2 + $0x151] sm:$0xff] }
 0x114   : > { %v1254_v25 = vadd.f32 %v1222_v2, %v1154_v3  ;;  %v4030_v16 = vmul.f32 %v3601_v24, %v692_v37  ;;  %v4033_v4 = vmul.f32 %v3593_v12, %v592_v52  ;;  %v4036_v38 = vmul.f32 %v3973_v34, %v692_v37  ;;  %v691_v47 = vld [vmem:[#allocation2 + $0x152] sm:$0xff] }
 0x115   : > { %v1055_v58 = vadd.f32 %v1023_v40, %v955_v8  ;;  %v1255_v13 = vadd.f32 %v1223_v26, %v1155_v28  ;;  %v1443_v33 = vsel %vm225_vm0, %v1407_v18, -inf  ;;  %v1444_v60 = vsel %vm225_vm0, %v1409_v5, -inf }
 0x116   : > { %v1354_v54 = vadd.f32 %v1322_v7, %v1254_v25  ;;  %v758_v52 = vadd.f32 %v3978_v17, %v658_v32  ;;  %v1056_v41 = vadd.f32 %v3983_v59, %v956_v44  ;;  %v1445_v20 = vmax.f32 %v1443_v33, %v1444_v60  ;;  %v694_v60 = vld [vmem:[#allocation2 + $0x172] sm:$0xff] }
 0x117   : > { %v1355_v26 = vadd.f32 %v3987_v35, %v1255_v13  ;;  %v559_v40 = vmul.f32 %v3571_v45, %v523_v21  ;;  %v560_v43 = vmul.f32 %v3571_v45, %v524_v15  ;;  %v627_v14 = vmul.f32 %v3573_v46, %v591_v1  ;;  %v594_v13 = vld [vmem:[#allocation2 + $0x171] sm:$0xff] }
 0x118   : > { %v1544_v29 = vld [vmem:[#allocation3 + $0x18] ss:$2 sm:$0xff]  ;;  %v1564_v18 = vld [vmem:[#allocation3 + $0x19] ss:$2 sm:$0xff]  ;;  %v1392_v51 = vadd.f32 %v3720_v30, %v1354_v54  ;;  %v727_v5 = vmul.f32 %v3578_v56, %v691_v47  ;;  %v825_v17 = vmul.f32 %v3587_v9, %v523_v21  ;;  %1510 = vst.msk [vmem:[#allocation3 + $0x3a] sm:$0xff] %vm225_vm0, %v1445_v20  ;;  %v826_v2 = vmul.f32 %v3587_v9, %v524_v15 }
 0x119   : > { %v1947_v37 = vld [vmem:[#allocation3 + $0x1a] ss:$2 sm:$0xff]  ;;  %v4053_v32 = vmax.f32 %v1544_v29, %v1564_v18  ;;  %v1967_v59 = vld [vmem:[#allocation3 + $0x1b] ss:$2 sm:$0xff]  ;;  %v4056_v35 = vadd.f32 %v3720_v30, %v1355_v26  ;;  %v660_v49 = vadd.f32 %v628_v42, %v560_v43  ;;  %v659_v7 = vadd.f32 %v627_v14, %v559_v40 }
 0x11a   : > { %v4060_v62 = vmax.f32 %v1947_v37, %v1967_v59  ;;  %v1424_v3 = vmax.f32 %v1392_v51, 0.0  ;;  %v857_v8 = vadd.f32 %v825_v17, %v757_v19  ;;  %v858_v44 = vadd.f32 %v826_v2, %v758_v52  ;;  %v525_v51 = vld [vmem:[#allocation2 + $0x168] sm:$0xff] }
 0x11b   : > { %3082 = vmatprep.mubr.msk.f32.mxu1 %vm225_vm0, %v4053_v32  ;;  %v1425_v28 = vmax.f32 %v4056_v35, 0.0  ;;  %v925_v25 = vmul.f32 %v3589_v10, %v591_v1  ;;  %v1025_v30 = vmul.f32 %v3601_v24, %v691_v47  ;;  %v759_v33 = vadd.f32 %v727_v5, %v659_v7 }
 0x11c   : > { %3146 = vmatprep.mubr.msk.f32.mxu0 %vm225_vm0, %v4060_v62  ;;  %v1465_v42 = vsel %vm225_vm0, %v1424_v3, -inf  ;;  %v1124_v54 = vmul.f32 %v3591_v11, %v523_v21  ;;  %v1125_v19 = vmul.f32 %v3591_v11, %v524_v15  ;;  %v958_v52 = vadd.f32 %v926_v22, %v858_v44  ;;  %v526_v22 = vld [vmem:[#allocation2 + $0x170] sm:$0xff] }
 0x11d   : > { %v1466_v26 = vmax.f32 %v4011_v31, %v1465_v42  ;;  %v957_v20 = vadd.f32 %v925_v25, %v857_v8  ;;  %v1224_v40 = vmul.f32 %v3593_v12, %v591_v1  ;;  %v1324_v18 = vmul.f32 %v3973_v34, %v691_v47  ;;  %v593_v1 = vld [vmem:[#allocation2 + $0x169] sm:$0xff] }
 0x11e   : > { %v1156_v43 = vadd.f32 %v1124_v54, %v1055_v58  ;;  %v1157_v29 = vadd.f32 %v1125_v19, %v1056_v41  ;;  %v630_v37 = vmul.f32 %v3573_v46, %v594_v13  ;;  %v4078_v21 = vmul.f32 %v3578_v56, %v694_v60  ;;  %v693_v58 = vld [vmem:[#allocation2 + $0x16a] sm:$0xff] }
 0x11f   : > { %1517 = vst.msk [vmem:[#allocation3 + $0x92] sm:$0xff] %vm225_vm0, %v1466_v26  ;;  %v1057_v14 = vadd.f32 %v1025_v30, %v957_v20  ;;  %v928_v15 = vmul.f32 %v3589_v10, %v594_v13  ;;  %v4082_v31 = vmul.f32 %v3601_v24, %v694_v60  ;;  %v1546_v41 = vld [vmem:[#allocation3 + $0x30] ss:$2 sm:$0xff]  ;;  %v1566_v5 = vld [vmem:[#allocation3 + $0x31] ss:$2 sm:$0xff]  ;;  %v1227_v2 = vmul.f32 %v3593_v12, %v594_v13 }
 0x120   : > { %v1949_v47 = vld [vmem:[#allocation3 + $0x32] ss:$2 sm:$0xff]  ;;  %v1256_v17 = vadd.f32 %v1224_v40, %v1156_v43  ;;  %v1257_v59 = vadd.f32 %v4033_v4, %v1157_v29  ;;  %v1327_v3 = vmul.f32 %v3973_v34, %v694_v60  ;;  %v4087_v7 = vmax.f32 %v1546_v41, %v1566_v5  ;;  %v1969_v8 = vld [vmem:[#allocation3 + $0x33] ss:$2 sm:$0xff] }
 0x121   : > { %v760_v44 = vadd.f32 %v4026_v55, %v660_v49  ;;  %v1058_v25 = vadd.f32 %v4030_v16, %v958_v52  ;;  %v561_v30 = vmul.f32 %v3571_v45, %v525_v51  ;;  %v4092_v42 = vmax.f32 %v1949_v47, %v1969_v8  ;;  %v894_v5 = vld [vmem:[#allocation2 + $0x189] sm:$0xff] }
 0x122   : > { %v1356_v54 = vadd.f32 %v1324_v18, %v1256_v17  ;;  %v1357_v19 = vadd.f32 %v4036_v38, %v1257_v59  ;;  %v562_v4 = vmul.f32 %v3571_v45, %v526_v22  ;;  %3083 = vmatmul.mubr.msk.f32.vlgmr.msra.gmra.mrb[0].mxu1 %vm225_vm0, %v4087_v7  ;;  %v629_v13 = vmul.f32 %v3573_v46, %v593_v1  ;;  %v4107_v38 = vld [vmem:[%s4414_s2] ss:$0 sm:$0xff]  ;;  %v994_v47 = vld [vmem:[#allocation2 + $0x18a] sm:$0xff] }
 0x123   : > { %v729_v60 = vmul.f32 %v3578_v56, %v693_v58  ;;  %v827_v55 = vmul.f32 %v3587_v9, %v525_v51  ;;  %v828_v16 = vmul.f32 %v3587_v9, %v526_v22  ;;  %3147 = vmatmul.mubr.msk.f32.vlgmr.msra.gmra.mrb[0].mxu0 %vm225_vm0, %v4092_v42  ;;  %v927_v56 = vmul.f32 %v3589_v10, %v593_v1 }
 0x124   : > { %v1394_v45 = vadd.f32 %v4107_v38, %v1356_v54  ;;  %v4111_v49 = vadd.f32 %v4107_v38, %v1357_v19  ;;  %v662_v46 = vadd.f32 %v630_v37, %v562_v4  ;;  %v661_v26 = vadd.f32 %v629_v13, %v561_v30  ;;  %v1094_v19 = vld [vmem:[#allocation2 + $0x198] sm:$0xff] }
 0x125   : > { %v859_v20 = vadd.f32 %v827_v55, %v759_v33  ;;  %v860_v52 = vadd.f32 %v828_v16, %v760_v44  ;;  %v1027_v40 = vmul.f32 %v3601_v24, %v693_v58  ;;  %v1126_v18 = vmul.f32 %v3591_v11, %v525_v51  ;;  %v1194_v55 = vld [vmem:[#allocation2 + $0x199] sm:$0xff] }
 0x126   : > { %v1426_v43 = vmax.f32 %v1394_v45, 0.0  ;;  %v1427_v29 = vmax.f32 %v4111_v49, 0.0  ;;  %v1127_v41 = vmul.f32 %v3591_v11, %v526_v22  ;;  %v761_v17 = vadd.f32 %v729_v60, %v661_v26  ;;  %v1095_v60 = vld [vmem:[#allocation2 + $0x1a0] sm:$0xff] }
 0x127   : > { %v959_v59 = vadd.f32 %v927_v56, %v859_v20  ;;  %v960_v8 = vadd.f32 %v928_v15, %v860_v52  ;;  %v1226_v37 = vmul.f32 %v3593_v12, %v593_v1  ;;  %v1158_v33 = vadd.f32 %v1126_v18, %v1057_v14  ;;  %v1295_v45 = vld [vmem:[#allocation2 + $0x1a2] sm:$0xff] }
 0x128   : > { %v4120_v30 = vsel %vm225_vm0, %v1426_v43, -inf  ;;  %v1159_v44 = vadd.f32 %v1127_v41, %v1058_v25  ;;  %v1326_v54 = vmul.f32 %v3973_v34, %v693_v58  ;;  %v930_v51 = vmul.f32 %v3589_v10, %v894_v5  ;;  %v1195_v25 = vld [vmem:[#allocation2 + $0x1a1] sm:$0xff] }
 0x129   : > { %v1059_v4 = vadd.f32 %v1027_v40, %v959_v59  ;;  %v1030_v22 = vmul.f32 %v3601_v24, %v994_v47  ;;  %v1229_v13 = vmul.f32 %v3593_v12, %v894_v5  ;;  %v1258_v15 = vadd.f32 %v1226_v37, %v1158_v33  ;;  %v1294_v58 = vld [vmem:[#allocation2 + $0x19a] sm:$0xff]  ;;  %v794_v40 = vld [vmem:[#allocation2 + $0x188] sm:$0xff] }
 0x12a   : > { %v1259_v16 = vadd.f32 %v1227_v2, %v1159_v44  ;;  %v1329_v1 = vmul.f32 %v3973_v34, %v994_v47  ;;  %v1449_v14 = vsel %vm225_vm0, %v1411_v48, -inf  ;;  %v1450_v56 = vsel %vm225_vm0, %v1413_v57, -inf  ;;  %v793_v2 = vld [vmem:[#allocation2 + $0x180] sm:$0xff] }
 0x12b   : > { %v762_v26 = vadd.f32 %v4078_v21, %v662_v46  ;;  %v1060_v20 = vadd.f32 %v4082_v31, %v960_v8  ;;  %v1130_v52 = vmul.f32 %v3591_v11, %v1094_v19  ;;  %v1358_v43 = vadd.f32 %v1326_v54, %v1258_v15  ;;  %v893_v41 = vld [vmem:[#allocation2 + $0x181] sm:$0xff] }
 0x12c   : > { %v1359_v18 = vadd.f32 %v1327_v3, %v1259_v16  ;;  %v1451_v36 = vmax.f32 %v1449_v14, %v1450_v56  ;;  %v1131_v48 = vmul.f32 %v3591_v11, %v1095_v60  ;;  %v993_v5 = vld [vmem:[#allocation2 + $0x182] sm:$0xff]  ;;  %v1230_v47 = vmul.f32 %v3593_v12, %v1194_v55 }
 0x12d   : > { %v1231_v23 = vmul.f32 %v3593_v12, %v1195_v25  ;;  %v4140_v57 = vmul.f32 %v3973_v34, %v1294_v58  ;;  %v4143_v21 = vmul.f32 %v3973_v34, %v1295_v45  ;;  %v1396_v31 = vadd.f32 %v4107_v38, %v1358_v43  ;;  %v1524_v58 = vld [vmem:[%s4415_s3 + $0x8] sm:$0xff]  ;;  %v1527_v45 = vld [vmem:[%s4415_s3 + $0x20] sm:$0xff] }
 0x12e   : > { %v4147_v46 = vadd.f32 %v4107_v38, %v1359_v18  ;;  %1512 = vst.msk [vmem:[#allocation3 + $0x52] sm:$0xff] %vm225_vm0, %v1451_v36  ;;  %v829_v3 = vmul.f32 %v3587_v9, %v793_v2  ;;  %v830_v59 = vmul.f32 %v3587_v9, %v794_v40  ;;  %v929_v8 = vmul.f32 %v3589_v10, %v893_v41  ;;  %v1537_v9 = vld [vmem:[%s4415_s3 + $0x70] sm:$0xff]  ;;  %v1538_v10 = vld [vmem:[%s4415_s3 + $0x78] sm:$0xff]  ;;  %v1528_v56 = vld [vmem:[%s4415_s3 + $0x28] sm:$0xff] }
 0x12f   : > { %v1029_v37 = vmul.f32 %v3601_v24, %v993_v5  ;;  %v1128_v33 = vmul.f32 %v3591_v11, %v793_v2  ;;  %v1129_v44 = vmul.f32 %v3591_v11, %v794_v40  ;;  %v1428_v54 = vmax.f32 %v1396_v31, 0.0  ;;  %v1523_v11 = vld [vmem:[%s4415_s3] sm:$0xff] }
 0x130   : > { %v1429_v19 = vmax.f32 %v4147_v46, 0.0  ;;  %v861_v60 = vadd.f32 %v829_v3, %v761_v17  ;;  %v862_v55 = vadd.f32 %v830_v59, %v762_v26  ;;  %v1228_v14 = vmul.f32 %v3593_v12, %v893_v41 }
 0x131   : > { %v1160_v15 = vadd.f32 %v1128_v33, %v1059_v4  ;;  %v1161_v16 = vadd.f32 %v1129_v44, %v1060_v20  ;;  %v1328_v25 = vmul.f32 %v3973_v34, %v993_v5  ;;  %v1471_v24 = vsel %vm225_vm0, %v1428_v54, -inf }
 0x132   : > { %v961_v17 = vadd.f32 %v929_v8, %v861_v60  ;;  %v962_v4 = vadd.f32 %v930_v51, %v862_v55  ;;  %v4421_v12 = vmax.f32 %v3883_v63, 0.0  ;;  %v1472_v26 = vmax.f32 %v4120_v30, %v1471_v24 }
 0x133   : > { %v1260_v20 = vadd.f32 %v1228_v14, %v1160_v15  ;;  %v1261_v51 = vadd.f32 %v1229_v13, %v1161_v16  ;;  %v4422_v63 = vmax.f32 %v3910_v27, 0.0  ;;  %v3242_v36 = vpack.c.bf16 %v1538_v10, %v1537_v9 }
 0x134   : > { %v1455_v34 = vsel %vm225_vm0, %v4421_v12, -inf  ;;  %v1061_v40 = vadd.f32 %v1029_v37, %v961_v17  ;;  %v1062_v43 = vadd.f32 %v1030_v22, %v962_v4  ;;  %1519 = vst.msk [vmem:[#allocation3 + $0xaa] sm:$0xff] %vm225_vm0, %v1472_v26  ;;  %v3226_v59 = vpack.c.bf16 %v1524_v58, %v1523_v11 }
 0x135   : > { %v1456_v2 = vsel %vm225_vm0, %v4422_v63, -inf  ;;  %v1548_v41 = vld [vmem:[#allocation3 + $0x48] ss:$2 sm:$0xff]  ;;  %v1568_v5 = vld [vmem:[#allocation3 + $0x49] ss:$2 sm:$0xff]  ;;  %v1360_v46 = vadd.f32 %v1328_v25, %v1260_v20  ;;  %v1361_v3 = vadd.f32 %v1329_v1, %v1261_v51  ;;  %v4186_v8 = vpack.c.bf16 %v1528_v56, %v1527_v45  ;;  %3243 = vmatprep.subr.bf16.mxu0 %v3242_v36  ;;  %v1533_v45 = vld [vmem:[%s4415_s3 + $0x50] sm:$0xff] }
 0x136   : > { %v1457_v18 = vmax.f32 %v1455_v34, %v1456_v2  ;;  %v1951_v31 = vld [vmem:[#allocation3 + $0x4a] ss:$2 sm:$0xff]  ;;  %v4188_v30 = vmax.f32 %v1548_v41, %v1568_v5  ;;  %v1971_v13 = vld [vmem:[#allocation3 + $0x4b] ss:$2 sm:$0xff]  ;;  %v1162_v27 = vadd.f32 %v1130_v52, %v1061_v40  ;;  %v1163_v33 = vadd.f32 %v1131_v48, %v1062_v43  ;;  %3245 = vmatpush3.bf16.msra.mxu0 %v3242_v36 }
 0x137   : > { %v4423_v22 = vmax.f32 %v3935_v6, 0.0  ;;  %v4194_v44 = vmax.f32 %v1951_v31, %v1971_v13  ;;  %v1398_v54 = vadd.f32 %v4107_v38, %v1360_v46  ;;  %v1399_v1 = vadd.f32 %v4107_v38, %v1361_v3  ;;  %3227 = vmatprep.subr.bf16.mxu1 %v3226_v59  ;;  %3247 = vmatprep.subr.bf16.mxu0 %v4186_v8  ;;  %v1534_v63 = vld [vmem:[%s4415_s3 + $0x58] sm:$0xff] }
 0x138   : > { %1514 = vst.msk [vmem:[#allocation3 + $0x6a] sm:$0xff] %vm225_vm0, %v1457_v18  ;;  %v1462_v60 = vsel %vm225_vm0, %v1421_v50, -inf  ;;  %3085 = vmatprep.mubr.msk.f32.mxu1 %vm225_vm0, %v4188_v30  ;;  %v1262_v52 = vadd.f32 %v1230_v47, %v1162_v27  ;;  %v1263_v48 = vadd.f32 %v1231_v23, %v1163_v33  ;;  %3229 = vmatpush3.bf16.msra.mxu1 %v3226_v59  ;;  %v1467_v55 = vsel %vm225_vm0, %v1423_v61, -inf  ;;  %v1535_v47 = vld [vmem:[%s4415_s3 + $0x60] sm:$0xff] }
 0x139   : > { %v1461_v37 = vsel %vm225_vm0, %v4423_v22, -inf  ;;  %3149 = vmatprep.mubr.msk.f32.mxu0 %vm225_vm0, %v4194_v44  ;;  %v1468_v0 = vsel %vm225_vm0, %v1425_v28, -inf  ;;  %v1473_v50 = vsel %vm225_vm0, %v1427_v29, -inf  ;;  %v1474_v49 = vsel %vm225_vm0, %v1429_v19, -inf }
 0x13a   : > { %v1463_v6 = vmax.f32 %v1461_v37, %v1462_v60  ;;  %v1362_v61 = vadd.f32 %v4140_v57, %v1262_v52  ;;  %v1363_v35 = vadd.f32 %v4143_v21, %v1263_v48  ;;  %v1469_v28 = vmax.f32 %v1467_v55, %v1468_v0 }
 0x13b   : > { %v1430_v29 = vmax.f32 %v1398_v54, 0.0  ;;  %v1475_v23 = vmax.f32 %v1473_v50, %v1474_v49  ;;  %v1431_v16 = vmax.f32 %v1399_v1, 0.0  ;;  %v4424_v25 = vmov 0.0   ;;  %v1542_v54 = vld [vmem:[#allocation3] ss:$2 sm:$0xff] }
 0x13c   : > { %1516 = vst.msk [vmem:[#allocation3 + $0x82] sm:$0xff] %vm225_vm0, %v1463_v6  ;;  %v1400_v15 = vadd.f32 %v4107_v38, %v1362_v61  ;;  %1518 = vst.msk [vmem:[#allocation3 + $0x9a] sm:$0xff] %vm225_vm0, %v1469_v28  ;;  %v1401_v14 = vadd.f32 %v4107_v38, %v1363_v35  ;;  %v4230_v57 = vpack.c.bf16 %v1536_v53, %v1535_v47  ;;  %v1562_v1 = vld [vmem:[#allocation3 + $0x1] ss:$2 sm:$0xff] }
 0x13d   : > { %1489 = vst.msk [vmem:[#allocation3 + $0xe8] sm:$0xf] %vm1484_vm3, %v4424_v25  ;;  %1485 = vst.msk [vmem:[#allocation3 + $0x10] sm:$0xf] %vm1484_vm3, %v4424_v25  ;;  %v1476_v38 = vsel %vm225_vm0, %v1430_v29, -inf  ;;  %v1479_v34 = vsel %vm225_vm0, %v1431_v16, -inf  ;;  %v3250_v59 = vpack.c.bf16 %v1534_v63, %v1533_v45  ;;  %v1581_v50 = vmax.f32 %v1542_v54, %v1562_v1 }
 0x13e   : > { %1520 = vst.msk [vmem:[#allocation3 + $0xb2] sm:$0xff] %vm225_vm0, %v1475_v23  ;;  %v1432_v19 = vmax.f32 %v1400_v15, 0.0  ;;  %v1433_v17 = vmax.f32 %v1401_v14, 0.0  ;;  %3231 = vmatprep.subr.bf16.mxu1 %v4230_v57  ;;  %v1525_v28 = vld [vmem:[%s4415_s3 + $0x10] sm:$0xff]  ;;  %v1526_v49 = vld [vmem:[%s4415_s3 + $0x18] sm:$0xff]  ;;  %v1539_v25 = vld [vmem:[%s4415_s3 + $0x80] sm:$0xff] }
 0x13f   : > { %v1550_v21 = vld [vmem:[#allocation3 + $0x60] ss:$2 sm:$0xff]  ;;  %v1570_v9 = vld [vmem:[#allocation3 + $0x61] ss:$2 sm:$0xff]  ;;  %v3234_v15 = vpack.c.bf16 %v1526_v49, %v1525_v28 }
 0x140   : > { %v1953_v10 = vld [vmem:[#allocation3 + $0x62] ss:$2 sm:$0xff]  ;;  %v4233_v11 = vmax.f32 %v1550_v21, %v1570_v9  ;;  %v1973_v24 = vld [vmem:[#allocation3 + $0x63] ss:$2 sm:$0xff]  ;;  %v1477_v12 = vsel %vm225_vm0, %v1432_v19, -inf  ;;  %v1480_v58 = vsel %vm225_vm0, %v1433_v17, -inf }
 0x141   : > { %v4236_v4 = vmax.f32 %v1953_v10, %v1973_v24  ;;  %v1478_v56 = vmax.f32 %v1476_v38, %v1477_v12  ;;  %v1481_v51 = vmax.f32 %v1479_v34, %v1480_v58  ;;  %v2366_v16 = vld [vmem:[#allocation3 + $0x1c] ss:$2 sm:$0xff]  ;;  %v2386_v14 = vld [vmem:[#allocation3 + $0x1d] ss:$2 sm:$0xff]  ;;  %v2370_v17 = vld [vmem:[#allocation3 + $0x4c] ss:$2 sm:$0xff] }
 0x142   : > { %3086 = vmatmul.mubr.msk.f32.gmra.mrb[2].mxu1 %vm225_vm0, %v4233_v11  ;;  %v2368_v21 = vld [vmem:[#allocation3 + $0x34] ss:$2 sm:$0xff]  ;;  %v2388_v9 = vld [vmem:[#allocation3 + $0x35] ss:$2 sm:$0xff]  ;;  %v2404_v19 = vmax.f32 %v2366_v16, %v2386_v14  ;;  %v2392_v34 = vld [vmem:[#allocation3 + $0x65] ss:$2 sm:$0xff] }
 0x143   : > { %3150 = vmatmul.mubr.msk.f32.gmra.mrb[2].mxu0 %vm225_vm0, %v4236_v4  ;;  %v1552_v26 = vld [vmem:[#allocation3 + $0x78] ss:$2 sm:$0xff]  ;;  %v1572_v20 = vld [vmem:[#allocation3 + $0x79] ss:$2 sm:$0xff]  ;;  %1521 = vst.msk [vmem:[#allocation3 + $0xc2] sm:$0xff] %vm225_vm0, %v1478_v56  ;;  %1522 = vst.msk [vmem:[#allocation3 + $0xca] sm:$0xff] %vm225_vm0, %v1481_v51  ;;  %v2405_v24 = vmax.f32 %v2368_v21, %v2388_v9 }
 0x144   : > { %3162 = vmatprep.mubr.msk.f32.mxu0 %vm225_vm0, %v4092_v42  ;;  %v4254_v2 = vmax.f32 %v1552_v26, %v1572_v20  ;;  %v1955_v40 = vld [vmem:[#allocation3 + $0x7a] ss:$2 sm:$0xff]  ;;  %v1975_v43 = vld [vmem:[#allocation3 + $0x7b] ss:$2 sm:$0xff] }
 0x145   : > { %v1554_v18 = vld [vmem:[#allocation3 + $0x90] ss:$2 sm:$0xff]  ;;  %v1574_v36 = vld [vmem:[#allocation3 + $0x91] ss:$2 sm:$0xff]  ;;  %v4264_v13 = vmax.f32 %v1955_v40, %v1975_v43 }
 0x146   : > { %v1957_v41 = vld [vmem:[#allocation3 + $0x92] ss:$2 sm:$0xff]  ;;  %3088 = vmatprep.mubr.msk.f32.mxu1 %vm225_vm0, %v4254_v2  ;;  %v4260_v5 = vmax.f32 %v1554_v18, %v1574_v36  ;;  %v1977_v31 = vld [vmem:[#allocation3 + $0x93] ss:$2 sm:$0xff]  ;;  %v1945_v36 = vld [vmem:[#allocation3 + $0x2] ss:$2 sm:$0xff] }
 0x147   : > { %v1556_v46 = vld [vmem:[#allocation3 + $0xa8] ss:$2 sm:$0xff]  ;;  %v1576_v3 = vld [vmem:[#allocation3 + $0xa9] ss:$2 sm:$0xff]  ;;  %3163 = vmatmul.mubr.msk.f32.vlgmr.msra.gmra.mrb[0].mxu0 %vm225_vm0, %v4194_v44  ;;  %v4272_v33 = vmax.f32 %v1957_v41, %v1977_v31  ;;  %v1540_v10 = vld [vmem:[%s4415_s3 + $0x88] sm:$0xff] }
 0x148   : > { %v4266_v27 = vmax.f32 %v1556_v46, %v1576_v3  ;;  %3165 = vmatprep.mubr.msk.f32.mxu0 %vm225_vm0, %v4236_v4  ;;  %3089 = vmatmul.mubr.msk.f32.gmra.mrb[4].mxu1 %vm225_vm0, %v4260_v5  ;;  %v1959_v22 = vld [vmem:[#allocation3 + $0xaa] ss:$2 sm:$0xff]  ;;  %v1979_v37 = vld [vmem:[#allocation3 + $0xab] ss:$2 sm:$0xff]  ;;  %v1963_v52 = vld [vmem:[#allocation3 + $0xda] ss:$2 sm:$0xff]  ;;  %v3254_v12 = vpack.c.bf16 %v1540_v10, %v1539_v25 }
 0x149   : > { %3249 = vmatpush3.bf16.msra.mxu0 %v4186_v8  ;;  %v4279_v60 = vmax.f32 %v1959_v22, %v1979_v37  ;;  %v1983_v48 = vld [vmem:[#allocation3 + $0xdb] ss:$2 sm:$0xff]  ;;  %v2364_v53 = vld [vmem:[#allocation3 + $0x4] ss:$2 sm:$0xff]  ;;  %v2376_v26 = vld [vmem:[#allocation3 + $0x94] ss:$2 sm:$0xff] }
 0x14a   : > { %3091 = vmatprep.mubr.msk.f32.mxu1 %vm225_vm0, %v4266_v27  ;;  %3251 = vmatprep.subr.bf16.mxu0 %v3250_v59  ;;  %v1558_v6 = vld [vmem:[#allocation3 + $0xc0] ss:$2 sm:$0xff]  ;;  %v1578_v55 = vld [vmem:[#allocation3 + $0xc1] ss:$2 sm:$0xff]  ;;  %v1993_v29 = vmax.f32 %v1963_v52, %v1983_v48  ;;  %v2983_v3 = vld [vmem:[%s4416_s4] ss:$0 sm:$0xff] }
 0x14b   : > { %3166 = vmatmul.mubr.msk.f32.gmra.mrb[2].mxu0 %vm225_vm0, %v4264_v13  ;;  %v1961_v0 = vld [vmem:[#allocation3 + $0xc2] ss:$2 sm:$0xff]  ;;  %v4283_v47 = vmax.f32 %v1558_v6, %v1578_v55  ;;  %v1981_v8 = vld [vmem:[#allocation3 + $0xc3] ss:$2 sm:$0xff] }
 0x14c   : > { %3168 = vmatprep.mubr.msk.f32.mxu0 %vm225_vm0, %v4272_v33  ;;  %v2384_v61 = vld [vmem:[#allocation3 + $0x5] ss:$2 sm:$0xff]  ;;  %v4285_v35 = vmax.f32 %v1961_v0, %v1981_v8  ;;  %v2374_v45 = vld [vmem:[#allocation3 + $0x7c] ss:$2 sm:$0xff]  ;;  %v2396_v20 = vld [vmem:[#allocation3 + $0x95] ss:$2 sm:$0xff] }
 0x14d   : > { %3092 = vmatmul.mubr.msk.f32.gmra.mrb[6].mxu1 %vm225_vm0, %v4283_v47  ;;  %v2403_v23 = vmax.f32 %v2364_v53, %v2384_v61  ;;  %v2390_v38 = vld [vmem:[#allocation3 + $0x4d] ss:$2 sm:$0xff]  ;;  %v2394_v56 = vld [vmem:[#allocation3 + $0x7d] ss:$2 sm:$0xff]  ;;  %v2409_v63 = vmax.f32 %v2376_v26, %v2396_v20  ;;  %v2378_v40 = vld [vmem:[#allocation3 + $0xac] ss:$2 sm:$0xff] }
 0x14e   : > { %3098 = vmatprep.mubr.msk.f32.mxu1 %vm225_vm0, %v1581_v50  ;;  %v2408_v51 = vmax.f32 %v2374_v45, %v2394_v56  ;;  %v2398_v43 = vld [vmem:[#allocation3 + $0xad] ss:$2 sm:$0xff]  ;;  %v2380_v31 = vld [vmem:[#allocation3 + $0xc4] ss:$2 sm:$0xff] }
 0x14f   : > { %3169 = vmatmul.mubr.msk.f32.gmra.mrb[4].mxu0 %vm225_vm0, %v4279_v60  ;;  %v2410_v18 = vmax.f32 %v2378_v40, %v2398_v43  ;;  %v1965_v41 = vld [vmem:[#allocation3 + $0x3] ss:$2 sm:$0xff] }
 0x150   : > { %3171 = vmatprep.mubr.msk.f32.mxu0 %vm225_vm0, %v4285_v35  ;;  %v2400_v46 = vld [vmem:[#allocation3 + $0xc5] ss:$2 sm:$0xff] }
 0x151   : > { %3099 = vmatmul.mubr.msk.f32.vlgmr.msra.gmra.mrb[0].mxu1 %vm225_vm0, %v4053_v32  ;;  %v2372_v32 = vld [vmem:[#allocation3 + $0x64] ss:$2 sm:$0xff] }
 0x152   : > { %3233 = vmatpush3.bf16.msra.mxu1 %v4230_v57  ;;  %3101 = vmatprep.mubr.msk.f32.mxu1 %vm225_vm0, %v4087_v7  ;;  %v2406_v57 = vmax.f32 %v2370_v17, %v2390_v38  ;;  %v2407_v58 = vmax.f32 %v2372_v32, %v2392_v34 }
 0x153   : > { %3172 = vmatmul.mubr.msk.f32.gmra.mrb[6].mxu0 %vm225_vm0, %v1993_v29  ;;  %3235 = vmatprep.subr.bf16.mxu1 %v3234_v15 }
 0x154   : > { %3178 = vmatprep.mubr.msk.f32.mxu0 %vm225_vm0, %v2403_v23 }
 0x155   : > { %3102 = vmatmul.mubr.msk.f32.gmra.mrb[2].mxu1 %vm225_vm0, %v4188_v30 }
 0x156   : > { %3104 = vmatprep.mubr.msk.f32.mxu1 %vm225_vm0, %v4233_v11 }
 0x157   : > { %3179 = vmatmul.mubr.msk.f32.vlgmr.msra.gmra.mrb[0].mxu0 %vm225_vm0, %v2404_v19 }
 0x158   : > { %3181 = vmatprep.mubr.msk.f32.mxu0 %vm225_vm0, %v2405_v24  ;;  %3253 = vmatpush3.bf16.msra.mxu0 %v3250_v59 }
 0x159   : > { %3255 = vmatprep.subr.bf16.mxu0 %v3254_v12  ;;  %3105 = vmatmul.mubr.msk.f32.gmra.mrb[4].mxu1 %vm225_vm0, %v4254_v2 }
 0x15a   : > { %3107 = vmatprep.mubr.msk.f32.mxu1 %vm225_vm0, %v4260_v5 }
 0x15b   : > { %3182 = vmatmul.mubr.msk.f32.gmra.mrb[2].mxu0 %vm225_vm0, %v2406_v57 }
 0x15c   : > { %3184 = vmatprep.mubr.msk.f32.mxu0 %vm225_vm0, %v2407_v58 }
 0x15d   : > { %3108 = vmatmul.mubr.msk.f32.gmra.mrb[6].mxu1 %vm225_vm0, %v4266_v27 }
 0x15e   : > { %3114 = vmatprep.mubr.msk.f32.mxu1 %vm225_vm0, %v4087_v7  ;;  %v1560_v7 = vld [vmem:[#allocation3 + $0xd8] ss:$2 sm:$0xff] }
 0x15f   : > { %3185 = vmatmul.mubr.msk.f32.gmra.mrb[4].mxu0 %vm225_vm0, %v2408_v51 }
 0x160   : > { %3187 = vmatprep.mubr.msk.f32.mxu0 %vm225_vm0, %v2409_v63 }
 0x161   : > { %3115 = vmatmul.mubr.msk.f32.vlgmr.msra.gmra.mrb[0].mxu1 %vm225_vm0, %v4188_v30  ;;  %v1580_v30 = vld [vmem:[#allocation3 + $0xd9] ss:$2 sm:$0xff] }
 0x162   : > { %3237 = vmatpush3.bf16.msra.mxu1 %v3234_v15  ;;  %3117 = vmatprep.mubr.msk.f32.mxu1 %vm225_vm0, %v4233_v11  ;;  %v1590_v11 = vmax.f32 %v1560_v7, %v1580_v30 }
 0x163   : > { %3188 = vmatmul.mubr.msk.f32.gmra.mrb[6].mxu0 %vm225_vm0, %v2410_v18  ;;  %3258 = vmatprep.subr.bf16.mxu1 %v3564_v39 }
 0x164   : > { %3194 = vmatprep.mubr.msk.f32.mxu0 %vm225_vm0, %v2404_v19 }
 0x165   : > { %3118 = vmatmul.mubr.msk.f32.gmra.mrb[2].mxu1 %vm225_vm0, %v4254_v2  ;;  %v1984_v2 = vmax.f32 %v1945_v36, %v1965_v41 }
 0x166   : > { %3120 = vmatprep.mubr.msk.f32.mxu1 %vm225_vm0, %v4260_v5  ;;  %v2411_v5 = vmax.f32 %v2380_v31, %v2400_v46 }
 0x167   : > { %3195 = vmatmul.mubr.msk.f32.vlgmr.msra.gmra.mrb[0].mxu0 %vm225_vm0, %v2405_v24 }
 0x168   : > { %3197 = vmatprep.mubr.msk.f32.mxu0 %vm225_vm0, %v2406_v57  ;;  %3257 = vmatpush3.bf16.msra.mxu0 %v3254_v12 }
 0x169   : > { %3121 = vmatmul.mubr.msk.f32.gmra.mrb[4].mxu1 %vm225_vm0, %v4266_v27 }
 0x16a   : > { %3123 = vmatprep.mubr.msk.f32.mxu1 %vm225_vm0, %v4283_v47 }
 0x16b   : > { %3198 = vmatmul.mubr.msk.f32.gmra.mrb[2].mxu0 %vm225_vm0, %v2407_v58 }
 0x16c   : > { %3200 = vmatprep.mubr.msk.f32.mxu0 %vm225_vm0, %v2408_v51 }
 0x16d   : > { %3124 = vmatmul.mubr.msk.f32.gmra.mrb[6].mxu1 %vm225_vm0, %v1590_v11 }
 0x16e   : > { %3130 = vmatprep.mubr.msk.f32.mxu1 %vm225_vm0, %v1984_v2 }
 0x16f   : > { %3201 = vmatmul.mubr.msk.f32.gmra.mrb[4].mxu0 %vm225_vm0, %v2409_v63 }
 0x170   : > { %3203 = vmatprep.mubr.msk.f32.mxu0 %vm225_vm0, %v2410_v18 }
 0x171   : > { %3131 = vmatmul.mubr.msk.f32.vlgmr.msra.gmra.mrb[0].mxu1 %vm225_vm0, %v4060_v62  ;;  %v2402_v62 = vld [vmem:[#allocation3 + $0xdd] ss:$2 sm:$0xff] }
 0x172   : > { %3259 = vmatpush3.bf16.msra.mxu1 %v3564_v39  ;;  %3133 = vmatprep.mubr.msk.f32.mxu1 %vm225_vm0, %v4092_v42  ;;  %v2382_v39 = vld [vmem:[#allocation3 + $0xdc] ss:$2 sm:$0xff] }
 0x173   : > { %3204 = vmatmul.mubr.msk.f32.gmra.mrb[6].mxu0 %vm225_vm0, %v2411_v5  ;;  %v2412_v42 = vmax.f32 %v2382_v39, %v2402_v62 }
 0x174   : > { %3210 = vmatprep.mubr.msk.f32.mxu0 %vm225_vm0, %v2405_v24 }
 0x175   : > { %3134 = vmatmul.mubr.msk.f32.gmra.mrb[2].mxu1 %vm225_vm0, %v4194_v44 }
 0x176   : > { %3136 = vmatprep.mubr.msk.f32.mxu1 %vm225_vm0, %v4236_v4 }
 0x177   : > { %3211 = vmatmul.mubr.msk.f32.vlgmr.msra.gmra.mrb[0].mxu0 %vm225_vm0, %v2406_v57 }
 0x178   : > { %3213 = vmatprep.mubr.msk.f32.mxu0 %vm225_vm0, %v2407_v58 }
 0x179   : > { %3137 = vmatmul.mubr.msk.f32.gmra.mrb[4].mxu1 %vm225_vm0, %v4264_v13 }
 0x17a   : > { %3139 = vmatprep.mubr.msk.f32.mxu1 %vm225_vm0, %v4272_v33 }
 0x17b   : > { %3214 = vmatmul.mubr.msk.f32.gmra.mrb[2].mxu0 %vm225_vm0, %v2408_v51 }
 0x17c   : > { %3216 = vmatprep.mubr.msk.f32.mxu0 %vm225_vm0, %v2409_v63 }
 0x17d   : > { %3140 = vmatmul.mubr.msk.f32.gmra.mrb[6].mxu1 %vm225_vm0, %v4279_v60 }
 0x17e   : > { %3152 = vmatprep.mubr.msk.f32.mxu1 %vm225_vm0, %v4264_v13 }
 0x17f   : > { %3217 = vmatmul.mubr.msk.f32.gmra.mrb[4].mxu0 %vm225_vm0, %v2410_v18 }
 0x180   : > { %3219 = vmatprep.mubr.msk.f32.mxu0 %vm225_vm0, %v2411_v5 }
 0x181   : > { %3153 = vmatmul.mubr.msk.f32.vlgmr.msra.gmra.mrb[4].mxu1 %vm225_vm0, %v4272_v33 }
 0x182   : > { %3155 = vmatprep.mubr.msk.f32.mxu1 %vm225_vm0, %v4279_v60 }
 0x183   : > { %3220 = vmatmul.mubr.msk.f32.gmra.mrb[6].mxu0 %vm225_vm0, %v2412_v42 }
 0x185   : > { %3156 = vmatmul.mubr.msk.f32.gmra.mrb[6].mxu1 %vm225_vm0, %v4285_v35 }
 0x244   : > { %v3132_v44 = vpop.f32.mrb[0].mxu1 }
 0x245   : > { %v2084_v4 = vpop.f32.mrb[1].mxu1 }
 0x248   : > { %v3135_v27 = vpop.f32.mrb[2].mxu1 }
 0x249   : > { %v2094_v37 = vpop.f32.mrb[3].mxu1 }
 0x24a   : > { %v3212_v59 = vpop.f32.mrb[0].mxu0 }
 0x24b   : > { %v3260_v13 = vadd.f32 %v3212_v59, %v3132_v44  ;;  %v2735_v22 = vpop.f32.mrb[1].mxu0 }
 0x24c   : > { %v3261_v54 = vadd.f32 %v2735_v22, %v2084_v4 }
 0x24d   : > { %v2789_v1 = vadd.f32 %v3260_v13, %v2983_v3 }
 0x24e   : > { %v2788_v33 = vadd.f32 %v3261_v54, %v2983_v3  ;;  %v3215_v52 = vpop.f32.mrb[2].mxu0 }
 0x24f   : > { %v2797_v60 = vmax.f32 %v2789_v1, 0.0  ;;  %v3262_v48 = vadd.f32 %v3215_v52, %v3135_v27  ;;  %v2745_v6 = vpop.f32.mrb[3].mxu0 }
 0x250   : > { %v2796_v55 = vmax.f32 %v2788_v33, 0.0  ;;  %v3263_v0 = vadd.f32 %v2745_v6, %v2094_v37 }
 0x251   : > { %v2806_v50 = vsel %vm2804_vm4, %v2797_v60, -inf  ;;  %v2791_v47 = vadd.f32 %v3262_v48, %v2983_v3 }
 0x252   : > { %v2805_v8 = vsel %vm2804_vm4, %v2796_v55, -inf  ;;  %v2790_v53 = vadd.f32 %v3263_v0, %v2983_v3  ;;  %v3218_v61 = vpop.f32.mrb[4].mxu0 }
 0x253   : > { %v2807_v35 = vmax.f32 %v2805_v8, %v2806_v50  ;;  %v2799_v28 = vmax.f32 %v2791_v47, 0.0  ;;  %v2755_v49 = vpop.f32.mrb[5].mxu0 }
 0x254   : > { %v2798_v29 = vmax.f32 %v2790_v53, 0.0  ;;  %v3154_v14 = vpop.f32.mrb[4].mxu1 }
 0x255   : > { %2817 = vst.msk [vmem:[#allocation4] sm:$0xff] %vm2804_vm4, %v2807_v35  ;;  %v2809_v23 = vsel %vm2804_vm4, %v2799_v28, -inf  ;;  %v3264_v9 = vadd.f32 %v3218_v61, %v3154_v14  ;;  %v2220_v10 = vpop.f32.mrb[5].mxu1 }
 0x256   : > { %v2808_v15 = vsel %vm2804_vm4, %v2798_v29, -inf  ;;  %v3221_v16 = vpop.f32.mrb[6].mxu0  ;;  %v3265_v19 = vadd.f32 %v2755_v49, %v2220_v10 }
 0x257   : > { %v2810_v25 = vmax.f32 %v2808_v15, %v2809_v23  ;;  %v2765_v21 = vpop.f32.mrb[7].mxu0  ;;  %v2793_v24 = vadd.f32 %v3264_v9, %v2983_v3 }
 0x258   : > { %v2792_v17 = vadd.f32 %v3265_v19, %v2983_v3  ;;  %v3157_v38 = vpop.f32.mrb[6].mxu1 }
 0x259   : > { %2818 = vst.msk [vmem:[#allocation4 + $0x8] sm:$0xff] %vm2804_vm4, %v2810_v25  ;;  %v2801_v12 = vmax.f32 %v2793_v24, 0.0  ;;  %v3266_v32 = vadd.f32 %v3221_v16, %v3157_v38  ;;  %v2230_v34 = vpop.f32.mrb[7].mxu1 }
 0x25a   : > { %v3267_v45 = vadd.f32 %v2765_v21, %v2230_v34  ;;  %v2800_v20 = vmax.f32 %v2792_v17, 0.0 }
 0x25b   : > { %v2812_v26 = vsel %vm2804_vm4, %v2801_v12, -inf  ;;  %v2795_v51 = vadd.f32 %v3266_v32, %v2983_v3 }
 0x25c   : > { %v2821_v57 = vld [vmem:[#allocation4] ss:$2 sm:$0xf]  ;;  %v2829_v58 = vld [vmem:[#allocation4 + $0x1] ss:$2 sm:$0xf]  ;;  %v2794_v63 = vadd.f32 %v3267_v45, %v2983_v3 }
 0x25d   : > { %v2836_v56 = vmax.f32 %v2821_v57, %v2829_v58  ;;  %v2811_v40 = vsel %vm2804_vm4, %v2800_v20, -inf  ;;  %v2803_v43 = vmax.f32 %v2795_v51, 0.0 }
 0x25e   : > { %v2813_v30 = vmax.f32 %v2811_v40, %v2812_v26  ;;  %v2802_v11 = vmax.f32 %v2794_v63, 0.0 }
 0x25f   : > { %2841 = vst.msk [vmem:[%s224_s30] sm:$0xf] %vm2840_vm5, %v2836_v56  ;;  %v2815_v41 = vsel %vm2804_vm4, %v2803_v43, -inf }
 0x260   : > { %v2823_v18 = vld [vmem:[#allocation4 + $0x8] ss:$2 sm:$0xf]  ;;  %v2831_v7 = vld [vmem:[#allocation4 + $0x9] ss:$2 sm:$0xf] }
 0x261   : > { %v2837_v36 = vmax.f32 %v2823_v18, %v2831_v7  ;;  %2819 = vst.msk [vmem:[#allocation4 + $0x10] sm:$0xff] %vm2804_vm4, %v2813_v30  ;;  %v2814_v2 = vsel %vm2804_vm4, %v2802_v11, -inf }
 0x262   : > { %v2816_v31 = vmax.f32 %v2814_v2, %v2815_v41 }
 0x263   : > { %2842 = vst.msk [vmem:[%s224_s30 + $0x4] sm:$0xf] %vm2840_vm5, %v2837_v36 }
 0x264   : > { %2820 = vst.msk [vmem:[#allocation4 + $0x18] sm:$0xff] %vm2804_vm4, %v2816_v31 }
 0x268   : > { %v2825_v46 = vld [vmem:[#allocation4 + $0x10] ss:$2 sm:$0xf]  ;;  %v2833_v5 = vld [vmem:[#allocation4 + $0x11] ss:$2 sm:$0xf] }
 0x269   : > { %v2838_v39 = vmax.f32 %v2825_v46, %v2833_v5 }
 0x26b   : > { %2843 = vst.msk [vmem:[%s224_s30 + $0x8] sm:$0xf] %vm2840_vm5, %v2838_v39  ;;  %v2827_v62 = vld [vmem:[#allocation4 + $0x18] ss:$2 sm:$0xf] }
 0x26c   : > { %v2835_v42 = vld [vmem:[#allocation4 + $0x19] ss:$2 sm:$0xf] }
 0x26d   : > { %v2839_v44 = vmax.f32 %v2827_v62, %v2835_v42 }
 0x26f   : > { %2844 = vst.msk [vmem:[%s224_s30 + $0xc] sm:$0xf] %vm2840_vm5, %v2839_v44 }
 0x270 PF: > { %s15_s18 = sadd.s32 1, %s3344_s18  }
 0x271   : > { %p12_p4 = scmp.ge.s32.totalorder %s15_s18, 4  }
 0x273   :  { %14 = sbr.rel (!%p12_p4) target bundleno = 1 (0x1), region = 141 }

</bundles_post_ra>
